<compile_context>
chip_gen: v6e
topology: v6e:2x2x1
jax: 0.10.0
libtpu: 0.0.40
codegen_flags: <defaults>
</compile_context>

<pallas_src>
import functools

import jax
import jax.numpy as jnp
import numpy as np
from jax.experimental import pallas as pl
from jax.experimental.pallas import tpu as pltpu


# ------------------------------ fused kernel ---------------------------------

def _fused_bottleneck_kernel(
    xp_ref,            # (1, H+2, Wp, Cin)  f32  zero-padded NHWC input (per-batch resident)
    w1_ref,            # (Cin, Cmid)        bf16 conv1 (1x1)
    s1_ref, b1_ref,    # (1, Cmid)          f32  folded BN1
    w2_ref,            # (9*Cmid, Cmid)     bf16 conv2 (3x3) im2col weights, tap-major
    s2_ref, b2_ref,    # (1, Cmid)          f32  folded BN2
    w3_ref,            # (Cmid, Cout)       bf16 conv3 (1x1)
    s3_ref, b3_ref,    # (1, Cout)          f32  folded BN3
    o_ref,             # (1, TH, W, Cout)   f32  output row tile
    h1s_ref,           # scratch VMEM (TH+2, Wp, Cmid) f32
    *, W, TH,
):
    Cin = w1_ref.shape[0]
    Cmid = w1_ref.shape[1]
    Cout = w3_ref.shape[1]
    Wp = xp_ref.shape[2]                 # padded width, multiple of 8
    i = pl.program_id(1)                 # row-tile index within the image
    row0 = pl.multiple_of(i * TH, TH)    # first padded row needed by this tile

    # ---- conv1 (1x1) + BN1 + ReLU on the (TH+2)-row halo slab ----------------
    n1 = (TH + 2) * Wp
    xs = xp_ref[0, pl.ds(row0, TH + 2), :, :]            # (TH+2, Wp, Cin) f32
    xs2d = xs.reshape(n1, Cin)                           # Wp % 8 == 0 -> no relayout
    h1 = jnp.dot(xs2d.astype(jnp.bfloat16), w1_ref[...],
                 preferred_element_type=jnp.float32)
    h1 = jnp.maximum(h1 * s1_ref[...] + b1_ref[...], 0.0)
    h1s_ref[...] = h1.reshape(TH + 2, Wp, Cmid)          # layout-preserving store

    # conv2 expects ZERO padding of its input; conv1+BN+ReLU of padded zeros is
    # relu(b1) != 0, so zero the padding ring with a few static stores instead
    # of a full-slab iota/div/mod mask.
    zcol = jnp.zeros((TH + 2, 1, Cmid), jnp.float32)
    h1s_ref[:, 0:1, :] = zcol                     # left pad column
    h1s_ref[:, W + 1:W + 2, :] = zcol             # right pad column (cols > W+1 never read)

    zrow = jnp.zeros((1, Wp, Cmid), jnp.float32)

    @pl.when(i == 0)
    def _():                                       # top image padding row
        h1s_ref[0:1, :, :] = zrow

    @pl.when(i == pl.num_programs(1) - 1)
    def _():                                       # bottom image padding row
        h1s_ref[TH + 1:TH + 2, :, :] = zrow

    # ---- conv2 (3x3) as one im2col matmul: K = 9*Cmid ------------------------
    tm = TH * W
    cols = []
    for kh in range(3):                            # statically unrolled taps
        for kw in range(3):
            patch = h1s_ref[kh:kh + TH, kw:kw + W, :]     # (TH, W, Cmid)
            cols.append(patch.reshape(tm, Cmid))
    pat = jnp.concatenate(cols, axis=-1)           # (TM, 9*Cmid) f32
    h2 = jnp.dot(pat.astype(jnp.bfloat16), w2_ref[...],
                 preferred_element_type=jnp.float32)
    h2 = jnp.maximum(h2 * s2_ref[...] + b2_ref[...], 0.0)     # BN2 + ReLU (f32)

    # ---- conv3 (1x1) + BN3 + residual + ReLU ---------------------------------
    h3 = jnp.dot(h2.astype(jnp.bfloat16), w3_ref[...],
                 preferred_element_type=jnp.float32)
    h3 = h3 * s3_ref[...] + b3_ref[...]                        # BN3
    # identity residual straight from the resident padded input (exact f32)
    identity = xp_ref[0, pl.ds(row0 + 1, TH), pl.ds(1, W), :].reshape(tm, Cin)
    out = jnp.maximum(h3 + identity, 0.0)
    o_ref[...] = out.reshape(1, TH, W, Cout)       # W % 8 == 0 -> layout-preserving


# --------------------------------- wrapper ------------------------------------

def _pick_tile_h(H, W, max_rows=2048):
    """Largest divisor TH of H with TH*W <= max_rows (falls back to TH=1)."""
    divs = [d for d in range(1, H + 1) if H % d == 0]
    fitting = [d for d in divs if d * W <= max_rows]
    return max(fitting) if fitting else 1


def vipnas_bottleneck_forward(x_nchw, params, tile_h=None):
    B, Cin, H, W = x_nchw.shape
    Cmid = params['w1'].shape[1]
    Cout = params['w3'].shape[1]
    assert Cin == Cout, "identity residual requires in_channels == out_channels"
    assert W % 8 == 0, "kernel tiling assumes W is a multiple of 8"

    TH = _pick_tile_h(H, W) if tile_h is None else tile_h
    assert H % TH == 0
    n_h = H // TH
    # Padded width rounded to a multiple of 8 (f32 sublane tile) so in-kernel
    # reshapes never relayout; only W+2 columns are ever read.
    Wp = ((W + 2 + 7) // 8) * 8

    # Single f32 padded NHWC input: feeds conv1 (cast to bf16 in-kernel) AND
    # the residual branch.  No duplicate identity tensor, no bf16 cast pass.
    x_nhwc = jnp.transpose(x_nchw, (0, 2, 3, 1)).astype(jnp.float32)
    xp = jnp.pad(x_nhwc, ((0, 0), (1, 1), (1, Wp - W - 1), (0, 0)))

    w1 = params['w1'].astype(jnp.bfloat16)                          # (Cin, Cmid)
    w2 = params['w2'].reshape(9 * Cmid, Cmid).astype(jnp.bfloat16)  # im2col layout
    w3 = params['w3'].astype(jnp.bfloat16)                          # (Cmid, Cout)

    # VMEM sanity: resident image + output tile are double-buffered; scratch
    # and in-kernel temporaries get a generous margin.
    vmem_est = (2 * (H + 2) * Wp * Cin * 4
                + 2 * TH * W * Cout * 4
                + (TH + 2) * Wp * Cmid * 4
                + 4 * (TH + 2) * Wp * max(Cin, 9 * Cmid) * 4)
    assert vmem_est < 40 * 1024 * 1024, "tile / image too large for the VMEM budget"

    kernel = functools.partial(_fused_bottleneck_kernel, W=W, TH=TH)

    out_nhwc = pl.pallas_call(
        kernel,
        out_shape=jax.ShapeDtypeStruct((B, H, W, Cout), jnp.float32),
        grid=(B, n_h),
        in_specs=[
            # full padded image per batch; index ignores the row-tile axis so it
            # stays VMEM-resident across all row tiles of the same image.
            pl.BlockSpec((1, H + 2, Wp, Cin), lambda b, i: (b, 0, 0, 0)),
            # weights / folded BN: constant index_maps -> resident across grid.
            pl.BlockSpec((Cin, Cmid), lambda b, i: (0, 0)),
            pl.BlockSpec((1, Cmid), lambda b, i: (0, 0)),
            pl.BlockSpec((1, Cmid), lambda b, i: (0, 0)),
            pl.BlockSpec((9 * Cmid, Cmid), lambda b, i: (0, 0)),
            pl.BlockSpec((1, Cmid), lambda b, i: (0, 0)),
            pl.BlockSpec((1, Cmid), lambda b, i: (0, 0)),
            pl.BlockSpec((Cmid, Cout), lambda b, i: (0, 0)),
            pl.BlockSpec((1, Cout), lambda b, i: (0, 0)),
            pl.BlockSpec((1, Cout), lambda b, i: (0, 0)),
        ],
        out_specs=pl.BlockSpec((1, TH, W, Cout), lambda b, i: (b, i, 0, 0)),
        scratch_shapes=[pltpu.VMEM((TH + 2, Wp, Cmid), jnp.float32)],
        compiler_params=pltpu.CompilerParams(
            dimension_semantics=("parallel", "parallel"),
            vmem_limit_bytes=40 * 1024 * 1024,   # fits v7x's 64 MiB/TC with headroom
        ),
    )(xp, w1, params['s1'], params['b1'],
      w2, params['s2'], params['b2'],
      w3, params['s3'], params['b3'])

    return jnp.transpose(out_nhwc, (0, 3, 1, 2))   # back to NCHW


# --------------------------- deterministic params -----------------------------

def _folded_bn(key, c):
    k1, k2, k3 = jax.random.split(key, 3)
    gamma = 1.0 + 0.1 * jax.random.normal(k1, (c,), jnp.float32)
    beta = 0.1 * jax.random.normal(k2, (c,), jnp.float32)
    mean = 0.05 * jax.random.normal(k3, (c,), jnp.float32)
    var = jnp.full((c,), 0.95, jnp.float32)
    eps = 1e-5
    scale = gamma / jnp.sqrt(var + eps)
    bias = beta - mean * scale
    return scale.reshape(1, c), bias.reshape(1, c)


def make_params(key, in_channels, out_channels, expansion=4):
    mid = out_channels // expansion
    ks = jax.random.split(key, 6)
    w1 = 0.1 * jax.random.normal(ks[0], (in_channels, mid), jnp.float32)   # 1x1
    w2 = 0.1 * jax.random.normal(ks[1], (9, mid, mid), jnp.float32)        # 3x3 taps [kh*3+kw, cin, cout]
    w3 = 0.1 * jax.random.normal(ks[2], (mid, out_channels), jnp.float32)  # 1x1
    s1, b1 = _folded_bn(ks[3], mid)
    s2, b2 = _folded_bn(ks[4], mid)
    s3, b3 = _folded_bn(ks[5], out_channels)
    return dict(w1=w1, w2=w2, w3=w3, s1=s1, b1=b1, s2=s2, b2=b2, s3=s3, b3=b3)


# ---------------------------- pure-JAX reference -------------------------------

def ref_forward(x_nchw, params, matmul_dtype=jnp.float32):
    """XLA reference.  matmul_dtype lets us mirror the kernel's bf16 MXU inputs."""
    x = jnp.transpose(x_nchw, (0, 2, 3, 1)).astype(jnp.float32)
    dn = ('NHWC', 'HWIO', 'NHWC')
    Cin = x.shape[-1]
    Cmid = params['w1'].shape[1]
    Cout = params['w3'].shape[1]

    def conv(h, w):
        return jax.lax.conv_general_dilated(
            h.astype(matmul_dtype), w.astype(matmul_dtype), (1, 1), 'SAME',
            dimension_numbers=dn, preferred_element_type=jnp.float32)

    def bn(h, s, b):
        return h * s.reshape(1, 1, 1, -1) + b.reshape(1, 1, 1, -1)

    h = conv(x, params['w1'].reshape(1, 1, Cin, Cmid))
    h = jnp.maximum(bn(h, params['s1'], params['b1']), 0.0)
    h = conv(h, params['w2'].reshape(3, 3, Cmid, Cmid))
    h = jnp.maximum(bn(h, params['s2'], params['b2']), 0.0)
    h = conv(h, params['w3'].reshape(1, 1, Cmid, Cout))
    h = bn(h, params['s3'], params['b3'])
    out = jnp.maximum(h + x, 0.0)               # identity residual in f32 (matches kernel)
    return jnp.transpose(out, (0, 3, 1, 2))


# ------------------------------------ main -------------------------------------

if __name__ == "__main__":
    key = jax.random.PRNGKey(0)
    kx, kp = jax.random.split(key)

    # in_channels = out_channels = 32, expansion=4 -> mid=8
    B, C, H, W = 2, 32, 16, 16
    x = jax.random.normal(kx, (B, C, H, W), jnp.float32)   # NCHW, like PyTorch
    params = make_params(kp, in_channels=C, out_channels=C, expansion=4)

    # tile_h=8 -> grid (2, 2): exercises the halo / multi-row-tile ring-zeroing path.
    out_tiled = jax.block_until_ready(vipnas_bottleneck_forward(x, params, tile_h=8))
    # default tile picker -> TH = H, grid (2, 1): larger MXU M per grid step.
    out_full = jax.block_until_ready(vipnas_bottleneck_forward(x, params))
    assert out_tiled.shape == (B, C, H, W) and out_full.shape == (B, C, H, W)

    # Reference with the same bf16-on-MXU precision as the kernel (tight check).
    ref_bf16 = jax.block_until_ready(ref_forward(x, params, matmul_dtype=jnp.bfloat16))
    # Pure f32 reference (loose check: bounds the bf16 matmul rounding error).
    ref_f32 = jax.block_until_ready(ref_forward(x, params, matmul_dtype=jnp.float32))

    for out in (out_tiled, out_full):
        np.testing.assert_allclose(np.asarray(out), np.asarray(ref_bf16), rtol=1e-2, atol=1e-2)
        np.testing.assert_allclose(np.asarray(out), np.asarray(ref_f32), rtol=3e-2, atol=3e-2)

    print("KERNEL_OK")
</pallas_src>

<mosaic_0001>
module attributes {stable_mosaic.version = 11 : i64} {
  func.func @_fused_bottleneck_kernel(%arg0: i32, %arg1: i32, %arg2: memref<1x18x24x32xf32, #tpu.memory_space<vmem>>, %arg3: memref<32x8xbf16, #tpu.memory_space<vmem>>, %arg4: memref<1x8xf32, #tpu.memory_space<vmem>>, %arg5: memref<1x8xf32, #tpu.memory_space<vmem>>, %arg6: memref<72x8xbf16, #tpu.memory_space<vmem>>, %arg7: memref<1x8xf32, #tpu.memory_space<vmem>>, %arg8: memref<1x8xf32, #tpu.memory_space<vmem>>, %arg9: memref<8x32xbf16, #tpu.memory_space<vmem>>, %arg10: memref<1x32xf32, #tpu.memory_space<vmem>>, %arg11: memref<1x32xf32, #tpu.memory_space<vmem>>, %arg12: memref<1x8x16x32xf32, #tpu.memory_space<vmem>>, %arg13: memref<10x24x8xf32, #tpu.memory_space<vmem>>) attributes {dimension_semantics = [#tpu.dimension_semantics<parallel>, #tpu.dimension_semantics<parallel>], iteration_bounds = array<i64: 2, 2>, scalar_prefetch = 0 : i64, scratch_operands = 1 : i64, tpu.core_type = #tpu.core_type<tc>, window_params = [{transform_indices = @transform_0, window_bounds = array<i64: 1, 18, 24, 32>}, {pipeline_mode = #tpu.pipeline_mode<synchronous>, transform_indices = @transform_1, window_bounds = array<i64: 32, 8>}, {pipeline_mode = #tpu.pipeline_mode<synchronous>, transform_indices = @transform_2, window_bounds = array<i64: 1, 8>}, {pipeline_mode = #tpu.pipeline_mode<synchronous>, transform_indices = @transform_3, window_bounds = array<i64: 1, 8>}, {pipeline_mode = #tpu.pipeline_mode<synchronous>, transform_indices = @transform_4, window_bounds = array<i64: 72, 8>}, {pipeline_mode = #tpu.pipeline_mode<synchronous>, transform_indices = @transform_5, window_bounds = array<i64: 1, 8>}, {pipeline_mode = #tpu.pipeline_mode<synchronous>, transform_indices = @transform_6, window_bounds = array<i64: 1, 8>}, {pipeline_mode = #tpu.pipeline_mode<synchronous>, transform_indices = @transform_7, window_bounds = array<i64: 8, 32>}, {pipeline_mode = #tpu.pipeline_mode<synchronous>, transform_indices = @transform_8, window_bounds = array<i64: 1, 32>}, {pipeline_mode = #tpu.pipeline_mode<synchronous>, transform_indices = @transform_9, window_bounds = array<i64: 1, 32>}, {transform_indices = @transform_10, window_bounds = array<i64: 1, 8, 16, 32>}]} {
    %c8_i32 = arith.constant 8 : i32
    %0 = arith.muli %arg1, %c8_i32 : i32
    %1 = tpu.assume_multiple %0, 8 : i32
    %c0 = arith.constant 0 : index
    %2 = arith.index_cast %1 : i32 to index
    %c0_0 = arith.constant 0 : index
    %c0_1 = arith.constant 0 : index
    %3 = vector.load %arg2[%c0, %2, %c0_0, %c0_1] : memref<1x18x24x32xf32, #tpu.memory_space<vmem>>, vector<1x10x24x32xf32>
    %4 = vector.shape_cast %3 : vector<1x10x24x32xf32> to vector<10x24x32xf32>
    %5 = vector.shape_cast %4 : vector<10x24x32xf32> to vector<240x32xf32>
    %6 = arith.truncf %5 : vector<240x32xf32> to vector<240x32xbf16>
    %c0_2 = arith.constant 0 : index
    %c0_3 = arith.constant 0 : index
    %7 = vector.load %arg3[%c0_2, %c0_3] : memref<32x8xbf16, #tpu.memory_space<vmem>>, vector<32x8xbf16>
    %cst = arith.constant dense<0.000000e+00> : vector<240x8xf32>
    %8 = tpu.matmul %6, %7, %cst {dimension_numbers = #tpu.dot_dimension_numbers<[1], [0], [0], [1], [0, 0, 1, 1], [], []>} : vector<240x32xbf16>, vector<32x8xbf16>, vector<240x8xf32> -> vector<240x8xf32>
    %c0_4 = arith.constant 0 : index
    %c0_5 = arith.constant 0 : index
    %9 = vector.load %arg4[%c0_4, %c0_5] : memref<1x8xf32, #tpu.memory_space<vmem>>, vector<1x8xf32>
    %10 = vector.broadcast %9 : vector<1x8xf32> to vector<240x8xf32>
    %11 = arith.mulf %8, %10 : vector<240x8xf32>
    %c0_6 = arith.constant 0 : index
    %c0_7 = arith.constant 0 : index
    %12 = vector.load %arg5[%c0_6, %c0_7] : memref<1x8xf32, #tpu.memory_space<vmem>>, vector<1x8xf32>
    %13 = vector.broadcast %12 : vector<1x8xf32> to vector<240x8xf32>
    %14 = arith.addf %11, %13 : vector<240x8xf32>
    %cst_8 = arith.constant 0.000000e+00 : f32
    %15 = vector.broadcast %cst_8 : f32 to vector<240x8xf32>
    %16 = arith.maximumf %14, %15 : vector<240x8xf32>
    %17 = vector.shape_cast %16 : vector<240x8xf32> to vector<10x24x8xf32>
    %c0_9 = arith.constant 0 : index
    %c0_10 = arith.constant 0 : index
    %c0_11 = arith.constant 0 : index
    %18 = vector.load %arg13[%c0_9, %c0_10, %c0_11] : memref<10x24x8xf32, #tpu.memory_space<vmem>>, vector<10x24x8xf32>
    tpu.vector_store %arg13[%c0_9, %c0_10, %c0_11], %17 {strides = array<i32>} : memref<10x24x8xf32, #tpu.memory_space<vmem>>, vector<10x24x8xf32>,
    %cst_12 = arith.constant 0.000000e+00 : f32
    %19 = vector.broadcast %cst_12 : f32 to vector<10x1x8xf32>
    %c0_13 = arith.constant 0 : index
    %c0_14 = arith.constant 0 : index
    %c0_15 = arith.constant 0 : index
    %20 = vector.load %arg13[%c0_13, %c0_14, %c0_15] : memref<10x24x8xf32, #tpu.memory_space<vmem>>, vector<10x1x8xf32>
    tpu.vector_store %arg13[%c0_13, %c0_14, %c0_15], %19 {strides = array<i32>} : memref<10x24x8xf32, #tpu.memory_space<vmem>>, vector<10x1x8xf32>,
    %c0_16 = arith.constant 0 : index
    %c17 = arith.constant 17 : index
    %c0_17 = arith.constant 0 : index
    %21 = vector.load %arg13[%c0_16, %c17, %c0_17] : memref<10x24x8xf32, #tpu.memory_space<vmem>>, vector<10x1x8xf32>
    tpu.vector_store %arg13[%c0_16, %c17, %c0_17], %19 {strides = array<i32>} : memref<10x24x8xf32, #tpu.memory_space<vmem>>, vector<10x1x8xf32>,
    %cst_18 = arith.constant 0.000000e+00 : f32
    %22 = vector.broadcast %cst_18 : f32 to vector<1x24x8xf32>
    %c0_i32 = arith.constant 0 : i32
    %23 = arith.cmpi eq, %arg1, %c0_i32 : i32
    %24 = arith.extui %23 : i1 to i32
    %c0_i32_19 = arith.constant 0 : i32
    %25 = arith.cmpi ne, %24, %c0_i32_19 : i32
    scf.if %25 {
      %c0_70 = arith.constant 0 : index
      %c0_71 = arith.constant 0 : index
      %c0_72 = arith.constant 0 : index
      %78 = vector.load %arg13[%c0_70, %c0_71, %c0_72] : memref<10x24x8xf32, #tpu.memory_space<vmem>>, vector<1x24x8xf32>
      tpu.vector_store %arg13[%c0_70, %c0_71, %c0_72], %22 {strides = array<i32>} : memref<10x24x8xf32, #tpu.memory_space<vmem>>, vector<1x24x8xf32>,
    } else {
    }
    %c1_i32 = arith.constant 1 : i32
    %26 = arith.cmpi eq, %arg1, %c1_i32 : i32
    %27 = arith.extui %26 : i1 to i32
    %c0_i32_20 = arith.constant 0 : i32
    %28 = arith.cmpi ne, %27, %c0_i32_20 : i32
    scf.if %28 {
      %c9 = arith.constant 9 : index
      %c0_70 = arith.constant 0 : index
      %c0_71 = arith.constant 0 : index
      %78 = vector.load %arg13[%c9, %c0_70, %c0_71] : memref<10x24x8xf32, #tpu.memory_space<vmem>>, vector<1x24x8xf32>
      tpu.vector_store %arg13[%c9, %c0_70, %c0_71], %22 {strides = array<i32>} : memref<10x24x8xf32, #tpu.memory_space<vmem>>, vector<1x24x8xf32>,
    } else {
    }
    %c0_21 = arith.constant 0 : index
    %c0_22 = arith.constant 0 : index
    %c0_23 = arith.constant 0 : index
    %29 = vector.load %arg13[%c0_21, %c0_22, %c0_23] : memref<10x24x8xf32, #tpu.memory_space<vmem>>, vector<8x16x8xf32>
    %30 = vector.shape_cast %29 : vector<8x16x8xf32> to vector<128x8xf32>
    %c0_24 = arith.constant 0 : index
    %c1 = arith.constant 1 : index
    %c0_25 = arith.constant 0 : index
    %31 = vector.load %arg13[%c0_24, %c1, %c0_25] : memref<10x24x8xf32, #tpu.memory_space<vmem>>, vector<8x16x8xf32>
    %32 = vector.shape_cast %31 : vector<8x16x8xf32> to vector<128x8xf32>
    %c0_26 = arith.constant 0 : index
    %c2 = arith.constant 2 : index
    %c0_27 = arith.constant 0 : index
    %33 = vector.load %arg13[%c0_26, %c2, %c0_27] : memref<10x24x8xf32, #tpu.memory_space<vmem>>, vector<8x16x8xf32>
    %34 = vector.shape_cast %33 : vector<8x16x8xf32> to vector<128x8xf32>
    %c1_28 = arith.constant 1 : index
    %c0_29 = arith.constant 0 : index
    %c0_30 = arith.constant 0 : index
    %35 = vector.load %arg13[%c1_28, %c0_29, %c0_30] : memref<10x24x8xf32, #tpu.memory_space<vmem>>, vector<8x16x8xf32>
    %36 = vector.shape_cast %35 : vector<8x16x8xf32> to vector<128x8xf32>
    %c1_31 = arith.constant 1 : index
    %c1_32 = arith.constant 1 : index
    %c0_33 = arith.constant 0 : index
    %37 = vector.load %arg13[%c1_31, %c1_32, %c0_33] : memref<10x24x8xf32, #tpu.memory_space<vmem>>, vector<8x16x8xf32>
    %38 = vector.shape_cast %37 : vector<8x16x8xf32> to vector<128x8xf32>
    %c1_34 = arith.constant 1 : index
    %c2_35 = arith.constant 2 : index
    %c0_36 = arith.constant 0 : index
    %39 = vector.load %arg13[%c1_34, %c2_35, %c0_36] : memref<10x24x8xf32, #tpu.memory_space<vmem>>, vector<8x16x8xf32>
    %40 = vector.shape_cast %39 : vector<8x16x8xf32> to vector<128x8xf32>
    %c2_37 = arith.constant 2 : index
    %c0_38 = arith.constant 0 : index
    %c0_39 = arith.constant 0 : index
    %41 = vector.load %arg13[%c2_37, %c0_38, %c0_39] : memref<10x24x8xf32, #tpu.memory_space<vmem>>, vector<8x16x8xf32>
    %42 = vector.shape_cast %41 : vector<8x16x8xf32> to vector<128x8xf32>
    %c2_40 = arith.constant 2 : index
    %c1_41 = arith.constant 1 : index
    %c0_42 = arith.constant 0 : index
    %43 = vector.load %arg13[%c2_40, %c1_41, %c0_42] : memref<10x24x8xf32, #tpu.memory_space<vmem>>, vector<8x16x8xf32>
    %44 = vector.shape_cast %43 : vector<8x16x8xf32> to vector<128x8xf32>
    %c2_43 = arith.constant 2 : index
    %c2_44 = arith.constant 2 : index
    %c0_45 = arith.constant 0 : index
    %45 = vector.load %arg13[%c2_43, %c2_44, %c0_45] : memref<10x24x8xf32, #tpu.memory_space<vmem>>, vector<8x16x8xf32>
    %46 = vector.shape_cast %45 : vector<8x16x8xf32> to vector<128x8xf32>
    %47 = tpu.concatenate %30, %32, %34, %36, %38, %40, %42, %44, %46 in 1 : vector<128x8xf32>, vector<128x8xf32>, vector<128x8xf32>, vector<128x8xf32>, vector<128x8xf32>, vector<128x8xf32>, vector<128x8xf32>, vector<128x8xf32>, vector<128x8xf32> -> vector<128x72xf32>
    %48 = arith.truncf %47 : vector<128x72xf32> to vector<128x72xbf16>
    %c0_46 = arith.constant 0 : index
    %c0_47 = arith.constant 0 : index
    %49 = vector.load %arg6[%c0_46, %c0_47] : memref<72x8xbf16, #tpu.memory_space<vmem>>, vector<72x8xbf16>
    %cst_48 = arith.constant dense<0.000000e+00> : vector<128x8xf32>
    %50 = tpu.matmul %48, %49, %cst_48 {dimension_numbers = #tpu.dot_dimension_numbers<[1], [0], [0], [1], [0, 0, 1, 1], [], []>} : vector<128x72xbf16>, vector<72x8xbf16>, vector<128x8xf32> -> vector<128x8xf32>
    %c0_49 = arith.constant 0 : index
    %c0_50 = arith.constant 0 : index
    %51 = vector.load %arg7[%c0_49, %c0_50] : memref<1x8xf32, #tpu.memory_space<vmem>>, vector<1x8xf32>
    %52 = vector.broadcast %51 : vector<1x8xf32> to vector<128x8xf32>
    %53 = arith.mulf %50, %52 : vector<128x8xf32>
    %c0_51 = arith.constant 0 : index
    %c0_52 = arith.constant 0 : index
    %54 = vector.load %arg8[%c0_51, %c0_52] : memref<1x8xf32, #tpu.memory_space<vmem>>, vector<1x8xf32>
    %55 = vector.broadcast %54 : vector<1x8xf32> to vector<128x8xf32>
    %56 = arith.addf %53, %55 : vector<128x8xf32>
    %cst_53 = arith.constant 0.000000e+00 : f32
    %57 = vector.broadcast %cst_53 : f32 to vector<128x8xf32>
    %58 = arith.maximumf %56, %57 : vector<128x8xf32>
    %59 = arith.truncf %58 : vector<128x8xf32> to vector<128x8xbf16>
    %c0_54 = arith.constant 0 : index
    %c0_55 = arith.constant 0 : index
    %60 = vector.load %arg9[%c0_54, %c0_55] : memref<8x32xbf16, #tpu.memory_space<vmem>>, vector<8x32xbf16>
    %cst_56 = arith.constant dense<0.000000e+00> : vector<128x32xf32>
    %61 = tpu.matmul %59, %60, %cst_56 {dimension_numbers = #tpu.dot_dimension_numbers<[1], [0], [0], [1], [0, 0, 1, 1], [], []>} : vector<128x8xbf16>, vector<8x32xbf16>, vector<128x32xf32> -> vector<128x32xf32>
    %c0_57 = arith.constant 0 : index
    %c0_58 = arith.constant 0 : index
    %62 = vector.load %arg10[%c0_57, %c0_58] : memref<1x32xf32, #tpu.memory_space<vmem>>, vector<1x32xf32>
    %63 = vector.broadcast %62 : vector<1x32xf32> to vector<128x32xf32>
    %64 = arith.mulf %61, %63 : vector<128x32xf32>
    %c0_59 = arith.constant 0 : index
    %c0_60 = arith.constant 0 : index
    %65 = vector.load %arg11[%c0_59, %c0_60] : memref<1x32xf32, #tpu.memory_space<vmem>>, vector<1x32xf32>
    %66 = vector.broadcast %65 : vector<1x32xf32> to vector<128x32xf32>
    %67 = arith.addf %64, %66 : vector<128x32xf32>
    %c1_i32_61 = arith.constant 1 : i32
    %68 = arith.addi %1, %c1_i32_61 : i32
    %c0_62 = arith.constant 0 : index
    %69 = arith.index_cast %68 : i32 to index
    %c1_63 = arith.constant 1 : index
    %c0_64 = arith.constant 0 : index
    %70 = vector.load %arg2[%c0_62, %69, %c1_63, %c0_64] : memref<1x18x24x32xf32, #tpu.memory_space<vmem>>, vector<1x8x16x32xf32>
    %71 = vector.shape_cast %70 : vector<1x8x16x32xf32> to vector<8x16x32xf32>
    %72 = vector.shape_cast %71 : vector<8x16x32xf32> to vector<128x32xf32>
    %73 = arith.addf %67, %72 : vector<128x32xf32>
    %cst_65 = arith.constant 0.000000e+00 : f32
    %74 = vector.broadcast %cst_65 : f32 to vector<128x32xf32>
    %75 = arith.maximumf %73, %74 : vector<128x32xf32>
    %76 = vector.shape_cast %75 : vector<128x32xf32> to vector<1x8x16x32xf32>
    %c0_66 = arith.constant 0 : index
    %c0_67 = arith.constant 0 : index
    %c0_68 = arith.constant 0 : index
    %c0_69 = arith.constant 0 : index
    %77 = vector.load %arg12[%c0_66, %c0_67, %c0_68, %c0_69] : memref<1x8x16x32xf32, #tpu.memory_space<vmem>>, vector<1x8x16x32xf32>
    tpu.vector_store %arg12[%c0_66, %c0_67, %c0_68, %c0_69], %76 {strides = array<i32>} : memref<1x8x16x32xf32, #tpu.memory_space<vmem>>, vector<1x8x16x32xf32>,
    return
  }
  func.func @transform_0(%arg0: i32, %arg1: i32) -> (i32, i32, i32, i32) {
    %c0_i32 = arith.constant 0 : i32
    %c0_i32_0 = arith.constant 0 : i32
    %c0_i32_1 = arith.constant 0 : i32
    %c0_i32_2 = arith.constant 0 : i32
    return %arg0, %c0_i32, %c0_i32_0, %c0_i32_1 : i32, i32, i32, i32
  }
  func.func @transform_1(%arg0: i32, %arg1: i32) -> (i32, i32) {
    %c0_i32 = arith.constant 0 : i32
    %c0_i32_0 = arith.constant 0 : i32
    %c0_i32_1 = arith.constant 0 : i32
    return %c0_i32, %c0_i32_0 : i32, i32
  }
  func.func @transform_2(%arg0: i32, %arg1: i32) -> (i32, i32) {
    %c0_i32 = arith.constant 0 : i32
    %c0_i32_0 = arith.constant 0 : i32
    %c0_i32_1 = arith.constant 0 : i32
    return %c0_i32, %c0_i32_0 : i32, i32
  }
  func.func @transform_3(%arg0: i32, %arg1: i32) -> (i32, i32) {
    %c0_i32 = arith.constant 0 : i32
    %c0_i32_0 = arith.constant 0 : i32
    %c0_i32_1 = arith.constant 0 : i32
    return %c0_i32, %c0_i32_0 : i32, i32
  }
  func.func @transform_4(%arg0: i32, %arg1: i32) -> (i32, i32) {
    %c0_i32 = arith.constant 0 : i32
    %c0_i32_0 = arith.constant 0 : i32
    %c0_i32_1 = arith.constant 0 : i32
    return %c0_i32, %c0_i32_0 : i32, i32
  }
  func.func @transform_5(%arg0: i32, %arg1: i32) -> (i32, i32) {
    %c0_i32 = arith.constant 0 : i32
    %c0_i32_0 = arith.constant 0 : i32
    %c0_i32_1 = arith.constant 0 : i32
    return %c0_i32, %c0_i32_0 : i32, i32
  }
  func.func @transform_6(%arg0: i32, %arg1: i32) -> (i32, i32) {
    %c0_i32 = arith.constant 0 : i32
    %c0_i32_0 = arith.constant 0 : i32
    %c0_i32_1 = arith.constant 0 : i32
    return %c0_i32, %c0_i32_0 : i32, i32
  }
  func.func @transform_7(%arg0: i32, %arg1: i32) -> (i32, i32) {
    %c0_i32 = arith.constant 0 : i32
    %c0_i32_0 = arith.constant 0 : i32
    %c0_i32_1 = arith.constant 0 : i32
    return %c0_i32, %c0_i32_0 : i32, i32
  }
  func.func @transform_8(%arg0: i32, %arg1: i32) -> (i32, i32) {
    %c0_i32 = arith.constant 0 : i32
    %c0_i32_0 = arith.constant 0 : i32
    %c0_i32_1 = arith.constant 0 : i32
    return %c0_i32, %c0_i32_0 : i32, i32
  }
  func.func @transform_9(%arg0: i32, %arg1: i32) -> (i32, i32) {
    %c0_i32 = arith.constant 0 : i32
    %c0_i32_0 = arith.constant 0 : i32
    %c0_i32_1 = arith.constant 0 : i32
    return %c0_i32, %c0_i32_0 : i32, i32
  }
  func.func @transform_10(%arg0: i32, %arg1: i32) -> (i32, i32, i32, i32) {
    %c0_i32 = arith.constant 0 : i32
    %c0_i32_0 = arith.constant 0 : i32
    %c0_i32_1 = arith.constant 0 : i32
    return %arg0, %arg1, %c0_i32, %c0_i32_0 : i32, i32, i32, i32
  }
}

</mosaic_0001>

<bundles_post_ra>
// kernel: tpu_custom_call.1
= control target key start
LH: loop header
LB: loop body
LE: loop exit
PB: predicated region body
PF: predicated region fallthrough
CT: control target
= control target key end

     0   :  { %s3997_s0 = inlined_call_operand.hbm [shape: f32[2,18,24,32], index: 0, kind: input, shape index: {}]   ;;  %s3998_s1 = inlined_call_operand.vmem [shape: bf16[32,8], index: 1, kind: input, shape index: {}]   ;;  %s3999_s2 = inlined_call_operand.vmem [shape: f32[1,8], index: 2, kind: input, shape index: {}]   ;;  %s4000_s3 = inlined_call_operand.vmem [shape: f32[1,8], index: 3, kind: input, shape index: {}]   ;;  %s4001_s4 = inlined_call_operand.vmem [shape: bf16[72,8], index: 4, kind: input, shape index: {}]   ;;  %s4002_s5 = inlined_call_operand.vmem [shape: f32[1,8], index: 5, kind: input, shape index: {}]   ;;  %s4003_s6 = inlined_call_operand.vmem [shape: f32[1,8], index: 6, kind: input, shape index: {}]   ;;  %s4004_s7 = inlined_call_operand.vmem [shape: bf16[8,32], index: 7, kind: input, shape index: {}]   ;;  %s4005_s8 = inlined_call_operand.vmem [shape: f32[1,32], index: 8, kind: input, shape index: {}]   ;;  %s4006_s9 = inlined_call_operand.vmem [shape: f32[1,32], index: 9, kind: input, shape index: {}]   ;;  %s4007_s10 = inlined_call_operand.hbm [shape: f32[2,16,16,32], index: 10, kind: output, shape index: {}]  }
   0x1   :  { %4015 = sst [smem:[#allocation18_spill]] %s4006_s9 }
   0x2   :  { %4016 = sst [smem:[#allocation19_spill]] %s4007_s10 }
   0x3   :  { %15 = vsyncpa [#allocation4], 0 }
   0x4   :  { %17 = vsyncpa [#allocation4 + $0x1], 0 }
   0x5   :  { %18 = vsyncpa [#allocation5], 0 }
   0x6   :  { %20 = vsyncpa [#allocation5 + $0x1], 0  ;;  %s3111_s13 = smov 0   ;;  %s3113_s14 = smov 0  }
   0x7   :  { %s3115_s15 = smov 0   ;;  %s3117_s16 = smov 0  }
   0x8   :  { %s3119_s17 = smov 0   ;;  %s3121_s18 = smov 0  }
   0x9   :  { %s3123_s19 = smov 0   ;;  %s3125_s20 = smov 0  }
   0xa   :  { %s3127_s21 = smov 0   ;;  %s3129_s22 = smov 0  }
   0xb   :  { %s3131_s23 = smov 0  }
   0xc LB: > { %4017 = sst [smem:[#allocation9_spill]] %s3005_s15  ;;  %s2208_s24 = sadd.s32 4294967295, %s3037_s23   ;;  %s3037_s23 = sphi %s3131_s23, %s26_s23   ;;  %s3033_s22 = sphi %s3129_s22, %s4041_s22   ;;  %s3029_s21 = sphi %s3127_s21, %s4040_s21   ;;  %s3025_s20 = sphi %s3125_s20, %s4039_s20   ;;  %s3021_s19 = sphi %s3123_s19, %s4038_s19   ;;  %s3017_s18 = sphi %s3121_s18, %s4037_s18   ;;  %s3013_s17 = sphi %s3119_s17, %s4045_s17   ;;  %s3009_s16 = sphi %s3117_s16, %s4044_s16   ;;  %s3005_s15 = sphi %s3115_s15, %s4035_s15   ;;  %s3001_s14 = sphi %s3113_s14, %s4043_s14   ;;  %s2997_s13 = sphi %s3111_s13, %s4042_s13  }
   0xd   : > { %4018 = sst [smem:[#allocation10_spill]] %s3017_s18  ;;  %s2209_s25 = sadd.s32 4294967294, %s3037_s23  }
   0xe   : > { %4019 = sst [smem:[#allocation11_spill]] %s3025_s20  ;;  %s35_s26 = sadd.s32 1, %s3029_s21 }
   0xf   : > { %4020 = sst [smem:[#allocation12_spill]] %s3029_s21  ;;  %s38_s27 = sadd.s32 1, %s3033_s22 }
  0x10   : > { %4021 = sst [smem:[#allocation13_spill]] %s3033_s22  ;;  %p36_p0 = scmp.ge.s32.totalorder %s35_s26, 2 }
  0x11   : > { %s45_s28 = sadd.s32 1, %s3017_s18  ;;  %p52_p1 = scmp.ne.s32.totalorder %s3017_s18, %s3013_s17 }
  0x12   : > { %p53_p2 = scmp.eq.s32.totalorder %s3037_s23, 0  ;;  %s4047_s26 = smov (%p36_p0, %s35_s26), 0 }
  0x13   : > { %4022 = sst [smem:[#allocation14_spill]] %s4047_s26  ;;  %s4049_s27 = smov (!%p36_p0, %s38_s27), %s3033_s22 }
  0x14   : > { %p3175_p3 = por %p53_p2, %p52_p1  ;;  %p58_p4 = scmp.ne.s32.totalorder %s3013_s17, %s3009_s16 }
  0x15   : > { %p40_p5 = scmp.ge.s32.totalorder %s4049_s27, 2  ;;  %p59_p6 = scmp.eq.s32.totalorder %s2208_s24, 0 }
  0x16   : > { %s258_s30 = ssub.s32 %s3029_s21, %s4047_s26  ;;  %s262_s11 = sadd.s32 1, %s3005_s15 }
  0x17   : > { %s4051_s27 = smov (%p40_p5, %s4049_s27), 0  ;;  %p3185_p7 = por %p59_p6, %p58_p4 }
  0x18   : > { %4024 = sst [smem:[#allocation15_spill]] %s4051_s27  ;;  %p272_p8 = scmp.ne.s32.totalorder %s3005_s15, %s3001_s14 }
  0x19   : > { %s42_s10 = ssub.s32 %s3033_s22, %s4051_s27  ;;  %p273_p9 = scmp.eq.s32.totalorder %s2208_s24, 3 }
  0x1a   : > { %p43_p10 = scmp.eq.s32.totalorder %s42_s10, 0  ;;  %s259_s16 = sor.u32 %s258_s30, %s42_s10 }
  0x1b   : > { %p260_p11 = scmp.eq.s32.totalorder %s259_s16, 0  ;;  %p3193_p12 = por %p273_p9, %p272_p8 }
  0x1c   : > { %s3198_s21 = scalar_select %p43_p10, %s3017_s18, %s45_s28  }
  0x1d   : > { %s3201_s20 = scalar_select %p260_p11, %s3005_s15, %s262_s11  }
  0x1e   : > { %4027 = sst [smem:[#allocation16_spill]] %s3198_s21  ;;  %p278_p13 = scmp.ne.s32.totalorder %s3001_s14, %s2997_s13 }
  0x1f   : > { %4028 = sst [smem:[#allocation17_spill]] %s3201_s20  ;;  %p279_p0 = scmp.eq.s32.totalorder %s2209_s25, 3 }
  0x20   : > { %p2457_p1 = scmp.lt.s32.totalorder %s3037_s23, 4  ;;  %s326_s24 = sand.u32 1, %s3017_s18  }
  0x21   : > { %p3206_p2 = por %p279_p0, %p278_p13  ;;  %s2442_s27 = smul.u32 432, %s326_s24 }
  0x22   : > { %s2443_s10 = smul.u32 6912, %s3033_s22  ;;  %p3214_p4 = pnand %p2457_p1, %p3175_p3 }
  0x23   : > { %s330_s21 = scalar_lea.vmem [#allocation3], %s2442_s27  ;;  %p2213_p5 = scmp.ge.s32.totalorder %s3037_s23, 1 }
  0x24   : > { %s336_s11 = scalar_lea.hbm %s3997_s0, %s2443_s10  ;;  %s337_s25 = sshll.u32 %s330_s21, 4  ;;  %s338_s25 = int_to_ptr.vmem [resolvable:$true] %s337_s25 }
  0x25   : > { %s327_s20 = scalar_lea.sflag [#allocation4], %s326_s24  ;;  %p2891_p6 = pneg %p3214_p4 }
  0x26   : > { %s2902_s18 = scalar_lea.vmem %s338_s25, 6912  ;;  %s3039_s29 = smov [#allocation3]  }
  0x27   : > { %p2903_p8 = scmp.ne.s32.totalorder %s338_s25, %s2902_s18  ;;  %s2907_s22 = sshll.u32 %s3039_s29, 4  ;;  %s2908_s22 = int_to_ptr.vmem [resolvable:$false] %s2907_s22 }
  0x28   : > { %s2909_s15 = scalar_lea.vmem %s2908_s22, 13824  ;;  %p2910_p3 = scmp.lt.s32.totalorder %s338_s25, %s2908_s22 }
  0x29   : > { %p2905_p9 = pnand %p2903_p8, %p2891_p6  ;;  %p2911_p11 = scmp.lt.s32.totalorder %s2909_s15, %s2902_s18 }
  0x2b   : > { %p2906_p10 = pneg %p2905_p9  ;;  %p2912_p13 = por %p2911_p11, %p2910_p3 }
  0x2d   : > { %p2913_p0 = pnand %p2912_p13, %p2906_p10 }
  0x2f   : > { %2916 = shalt.err (!%p2913_p0)
}
  0x30   : > { %s3040_s27 = smov 128   ;;  %s3041_s21 = smov 8  }
  0x31   : > { %2452 = dma.hbm_to_vmem [thread:$0]  (!%p3214_p4), %s336_s11, 6912, %s338_s25, %s327_s20, %s3040_s27, %s3040_s27, %s3041_s21  }
  0x32   : > { %p345_p1 = scmp.lt.s32.totalorder %s3037_s23, 5 }
  0x34   : > { %p346_p6 = pnand %p2213_p5, %p345_p1 }
  0x35   : > { %s351_s24 = sand.u32 (!%p346_p6), 1, %s3013_s17  }
  0x36   : > { %349 = sbr.rel (%p346_p6) target bundleno = 1054 (0x41e), region = 60  ;;  %s352_s22 = scalar_lea.sflag (!%p346_p6), [#allocation4], %s351_s24 }
  0x37   : > { %s2444_s10 = smul.u32 (!%p346_p6), 432, %s351_s24 }
  0x39   : > { %s355_s15 = scalar_lea.vmem (!%p346_p6), [#allocation3], %s2444_s10 }
  0x3b   : > { %2988 = dma.done.wait (%p3185_p7), %s352_s22, 6912  }
  0x3c   : > { %2990 = vsyncadd (%p3185_p7), %s352_s22, 4294960384  ;;  %s389_s18 = sand.u32 1, %s3001_s14   ;;  %v3042_v0 = vmov 0.0   ;;  %vm3043_vm0 = vmmov 0   ;;  %s2216_s30 = smul.u32 192, %s3021_s19  ;;  %v2562_v1 = vld [vmem:[%s3998_s1 + $0x8] sm:$0xff]  }
  0x3d   : > { %s3237_s20 = sshll.u32 %s389_s18, 7  ;;  %2328 = vmatprep.subr.bf16.mxu0 %v3042_v0  ;;  %2332 = vmatprep.mubr.msk.bf16.mxu0 %vm3043_vm0, %v3042_v0  ;;  %v2563_v2 = vld [vmem:[%s3998_s1] sm:$0xff]   ;;  %vm458_vm1 = vcmask 261120   ;;  %vm761_vm2 = vcmask 64512   ;;  %vm792_vm3 = vcmask 57344   ;;  %p2236_p7 = scmp.ne.s32.totalorder %s3021_s19, 0 }
  0x3e   : > { %2436 = vmatprep.subr.bf16.mxu1 %v3042_v0  ;;  %2380 = vmatprep.mubr.msk.bf16.mxu1 %vm3043_vm0, %v3042_v0  ;;  %s3246_s12 = scalar_lea.vmem %s355_s15, %s2216_s30 [#allocation3]  ;;  %v3330_v48 = vld [vmem:[%s3999_s2] ss:$0 sm:$0xff]  ;;  %s3468_s10 = scalar_lea.vmem [#allocation6], %s3237_s20 }
  0x3f   : > { %2329 = vmatpush3.bf16.msra.mxu0 %v2562_v1  ;;  %v397_v3 = vld [vmem:[%s3246_s12] sm:$0xff]  ;;  %v398_v4 = vld [vmem:[%s3246_s12 + $0x8] sm:$0xff]  ;;  %2438 = vmatpush3.bf16.msra.mxu1 %v2562_v1  ;;  %v399_v9 = vld [vmem:[%s3246_s12 + $0x10] sm:$0xff] }
  0x40   : > { %2330 = vmatprep.subr.bf16.mxu0 %v3042_v0  ;;  %2437 = vmatprep.subr.bf16.mxu1 %v3042_v0  ;;  %v427_v5 = vpack.c.bf16 %v398_v4, %v397_v3  ;;  %v421_v6 = vld [vmem:[%s3246_s12 + $0xc0] sm:$0xff]  ;;  %v422_v7 = vld [vmem:[%s3246_s12 + $0xc8] sm:$0xff]  ;;  %v400_v10 = vld [vmem:[%s3246_s12 + $0x18] sm:$0xff] }
  0x41   : > { %v439_v8 = vpack.c.bf16 %v422_v7, %v421_v6  ;;  %v423_v11 = vld [vmem:[%s3246_s12 + $0xd0] sm:$0xff]  ;;  %v424_v12 = vld [vmem:[%s3246_s12 + $0xd8] sm:$0xff]  ;;  %v428_v13 = vpack.c.bf16 %v400_v10, %v399_v9  ;;  %v401_v15 = vld [vmem:[%s3246_s12 + $0x20] sm:$0xff] }
  0x42   : > { %v440_v14 = vpack.c.bf16 %v424_v12, %v423_v11  ;;  %v402_v16 = vld [vmem:[%s3246_s12 + $0x28] sm:$0xff]  ;;  %v425_v17 = vld [vmem:[%s3246_s12 + $0xe0] sm:$0xff]  ;;  %v403_v21 = vld [vmem:[%s3246_s12 + $0x30] sm:$0xff] }
  0x43   : > { %2331 = vmatpush3.bf16.msra.mxu0 %v2563_v2  ;;  %2439 = vmatpush3.bf16.msra.mxu1 %v2563_v2  ;;  %v426_v18 = vld [vmem:[%s3246_s12 + $0xe8] sm:$0xff]  ;;  %v429_v19 = vpack.c.bf16 %v402_v16, %v401_v15  ;;  %v404_v22 = vld [vmem:[%s3246_s12 + $0x38] sm:$0xff]  ;;  %v405_v24 = vld [vmem:[%s3246_s12 + $0x40] sm:$0xff] }
  0x44   : > { %v441_v20 = vpack.c.bf16 %v426_v18, %v425_v17  ;;  %v430_v23 = vpack.c.bf16 %v404_v22, %v403_v21  ;;  %v406_v25 = vld [vmem:[%s3246_s12 + $0x48] sm:$0xff]  ;;  %v407_v27 = vld [vmem:[%s3246_s12 + $0x50] sm:$0xff]  ;;  %v408_v28 = vld [vmem:[%s3246_s12 + $0x58] sm:$0xff] }
  0x45   : > { %v431_v26 = vpack.c.bf16 %v406_v25, %v405_v24  ;;  %v432_v29 = vpack.c.bf16 %v408_v28, %v407_v27  ;;  %v409_v30 = vld [vmem:[%s3246_s12 + $0x60] sm:$0xff]  ;;  %v410_v31 = vld [vmem:[%s3246_s12 + $0x68] sm:$0xff]  ;;  %v411_v33 = vld [vmem:[%s3246_s12 + $0x70] sm:$0xff] }
  0x46   : > { %2333 = vmatmul.mubr.msk.bf16.vlgmr.msra.gmra.mxu0 %vm458_vm1, %v427_v5  ;;  %2381 = vmatmul.mubr.msk.bf16.vlgmr.msra.gmra.mxu1 %vm458_vm1, %v439_v8  ;;  %v433_v32 = vpack.c.bf16 %v410_v31, %v409_v30  ;;  %v412_v34 = vld [vmem:[%s3246_s12 + $0x78] sm:$0xff]  ;;  %v413_v36 = vld [vmem:[%s3246_s12 + $0x80] sm:$0xff]  ;;  %v414_v37 = vld [vmem:[%s3246_s12 + $0x88] sm:$0xff] }
  0x47   : > { %2336 = vmatprep.mubr.msk.bf16.mxu0 %vm3043_vm0, %v3042_v0  ;;  %2384 = vmatprep.mubr.msk.bf16.mxu1 %vm3043_vm0, %v3042_v0  ;;  %v434_v35 = vpack.c.bf16 %v412_v34, %v411_v33  ;;  %v435_v38 = vpack.c.bf16 %v414_v37, %v413_v36  ;;  %v415_v39 = vld [vmem:[%s3246_s12 + $0x90] sm:$0xff]  ;;  %v416_v40 = vld [vmem:[%s3246_s12 + $0x98] sm:$0xff]  ;;  %v417_v42 = vld [vmem:[%s3246_s12 + $0xa0] sm:$0xff] }
  0x48   : > { %v436_v41 = vpack.c.bf16 %v416_v40, %v415_v39  ;;  %v418_v43 = vld [vmem:[%s3246_s12 + $0xa8] sm:$0xff]  ;;  %v419_v45 = vld [vmem:[%s3246_s12 + $0xb0] sm:$0xff]  ;;  %v420_v46 = vld [vmem:[%s3246_s12 + $0xb8] sm:$0xff] }
  0x49   : > { %v437_v44 = vpack.c.bf16 %v418_v43, %v417_v42  ;;  %v438_v47 = vpack.c.bf16 %v420_v46, %v419_v45  ;;  %v3335_v50 = vld [vmem:[%s4000_s3] ss:$0 sm:$0xff] }
  0x4e   : > { %2337 = vmatmul.mubr.msk.bf16.gmra.mxu0 %vm458_vm1, %v428_v13  ;;  %2385 = vmatmul.mubr.msk.bf16.gmra.mxu1 %vm458_vm1, %v440_v14 }
  0x4f   : > { %2340 = vmatprep.mubr.msk.bf16.mxu0 %vm3043_vm0, %v3042_v0  ;;  %2388 = vmatprep.mubr.msk.bf16.mxu1 %vm3043_vm0, %v3042_v0 }
  0x56   : > { %2341 = vmatmul.mubr.msk.bf16.gmra.mxu0 %vm458_vm1, %v429_v19  ;;  %2389 = vmatmul.mubr.msk.bf16.gmra.mxu1 %vm458_vm1, %v441_v20 }
  0x57   : > { %2344 = vmatprep.mubr.msk.bf16.mxu0 %vm3043_vm0, %v3042_v0 }
  0x5e   : > { %2345 = vmatmul.mubr.msk.bf16.gmra.mxu0 %vm458_vm1, %v430_v23 }
  0x5f   : > { %2348 = vmatprep.mubr.msk.bf16.mxu0 %vm3043_vm0, %v3042_v0 }
  0x66   : > { %2349 = vmatmul.mubr.msk.bf16.gmra.mxu0 %vm458_vm1, %v431_v26 }
  0x67   : > { %2352 = vmatprep.mubr.msk.bf16.mxu0 %vm3043_vm0, %v3042_v0 }
  0x6e   : > { %2353 = vmatmul.mubr.msk.bf16.gmra.mxu0 %vm458_vm1, %v432_v29 }
  0x6f   : > { %2356 = vmatprep.mubr.msk.bf16.mxu0 %vm3043_vm0, %v3042_v0 }
  0x76   : > { %2357 = vmatmul.mubr.msk.bf16.gmra.mxu0 %vm458_vm1, %v433_v32 }
  0x77   : > { %2360 = vmatprep.mubr.msk.bf16.mxu0 %vm3043_vm0, %v3042_v0 }
  0x7e   : > { %2361 = vmatmul.mubr.msk.bf16.gmra.mxu0 %vm458_vm1, %v434_v35 }
  0x7f   : > { %2364 = vmatprep.mubr.msk.bf16.mxu0 %vm3043_vm0, %v3042_v0 }
  0x86   : > { %2365 = vmatmul.mubr.msk.bf16.gmra.mxu0 %vm458_vm1, %v435_v38 }
  0x87   : > { %2368 = vmatprep.mubr.msk.bf16.mxu0 %vm3043_vm0, %v3042_v0 }
  0x8e   : > { %2369 = vmatmul.mubr.msk.bf16.gmra.mxu0 %vm458_vm1, %v436_v41 }
  0x8f   : > { %2372 = vmatprep.mubr.msk.bf16.mxu0 %vm3043_vm0, %v3042_v0 }
  0x96   : > { %2373 = vmatmul.mubr.msk.bf16.gmra.mxu0 %vm458_vm1, %v437_v44 }
  0x97   : > { %2376 = vmatprep.mubr.msk.bf16.mxu0 %vm3043_vm0, %v3042_v0 }
  0x9e   : > { %2377 = vmatmul.mubr.msk.bf16.gmra.mxu0 %vm458_vm1, %v438_v47 }
 0x106   : > { %v538_v49 = vpop.f32.mrf.mxu0  ;;  %v634_v53 = vpop.f32.mrf.mxu1 }
 0x107   : > { %v664_v51 = vmul.f32 %v3330_v48, %v538_v49  ;;  %v688_v55 = vmul.f32 %v3330_v48, %v634_v53 }
 0x108   : > { %v2334_v52 = vpop.f32.mrf.mxu0  ;;  %v2382_v57 = vpop.f32.mrf.mxu1 }
 0x109   : > { %v701_v54 = vadd.f32 %v3335_v50, %v664_v51  ;;  %v725_v60 = vadd.f32 %v3335_v50, %v688_v55 }
 0x10a   : > { %v541_v56 = vpop.f32.mrf.mxu0  ;;  %v637_v62 = vpop.f32.mrf.mxu1 }
 0x10b   : > { %v731_v58 = vmax.f32 %v701_v54, 0.0  ;;  %v665_v59 = vmul.f32 %v3330_v48, %v541_v56  ;;  %v755_v1 = vmax.f32 %v725_v60, 0.0  ;;  %v689_v2 = vmul.f32 %v3330_v48, %v637_v62 }
 0x10c   : > { %v2335_v61 = vpop.f32.mrf.mxu0  ;;  %v2383_v4 = vpop.f32.mrf.mxu1 }
 0x10d   : > { %762 = vst.msk [vmem:[#allocation2] sm:$0xff] %vm761_vm2, %v731_v58  ;;  %v702_v63 = vadd.f32 %v3335_v50, %v665_v59  ;;  %786 = vst.msk [vmem:[#allocation2 + $0xc0] sm:$0xff] %vm761_vm2, %v755_v1  ;;  %v726_v7 = vadd.f32 %v3335_v50, %v689_v2 }
 0x10e   : > { %793 = vst.msk [vmem:[#allocation2] sm:$0x1] %vm792_vm3, %v3042_v0  ;;  %v546_v3 = vpop.f32.mrf.mxu0  ;;  %801 = vst.msk [vmem:[#allocation2 + $0xc0] sm:$0x1] %vm792_vm3, %v3042_v0  ;;  %v642_v9 = vpop.f32.mrf.mxu1 }
 0x10f   : > { %v732_v5 = vmax.f32 %v702_v63, 0.0  ;;  %v666_v6 = vmul.f32 %v3330_v48, %v546_v3  ;;  %v756_v11 = vmax.f32 %v726_v7, 0.0  ;;  %v690_v12 = vmul.f32 %v3330_v48, %v642_v9 }
 0x110   : > { %v2338_v8 = vpop.f32.mrf.mxu0  ;;  %v2386_v14 = vpop.f32.mrf.mxu1 }
 0x111   : > { %763 = vst.msk [vmem:[#allocation2 + $0x8] sm:$0xff] %vm761_vm2, %v732_v5  ;;  %v703_v10 = vadd.f32 %v3335_v50, %v666_v6  ;;  %787 = vst.msk [vmem:[#allocation2 + $0xc8] sm:$0xff] %vm761_vm2, %v756_v11  ;;  %v727_v17 = vadd.f32 %v3335_v50, %v690_v12 }
 0x112   : > { %v549_v13 = vpop.f32.mrf.mxu0  ;;  %v645_v19 = vpop.f32.mrf.mxu1 }
 0x113   : > { %v733_v15 = vmax.f32 %v703_v10, 0.0  ;;  %v667_v16 = vmul.f32 %v3330_v48, %v549_v13  ;;  %v757_v21 = vmax.f32 %v727_v17, 0.0  ;;  %v691_v22 = vmul.f32 %v3330_v48, %v645_v19 }
 0x114   : > { %v2339_v18 = vpop.f32.mrf.mxu0  ;;  %v2387_v24 = vpop.f32.mrf.mxu1 }
 0x115   : > { %764 = vst.msk [vmem:[#allocation2 + $0x10] sm:$0xff] %vm761_vm2, %v733_v15  ;;  %v704_v20 = vadd.f32 %v3335_v50, %v667_v16  ;;  %788 = vst.msk [vmem:[#allocation2 + $0xd0] sm:$0xff] %vm761_vm2, %v757_v21  ;;  %v728_v27 = vadd.f32 %v3335_v50, %v691_v22 }
 0x116   : > { %803 = vst.msk [vmem:[#allocation2 + $0x11] sm:$0x1] %vm792_vm3, %v3042_v0  ;;  %v554_v23 = vpop.f32.mrf.mxu0  ;;  %811 = vst.msk [vmem:[#allocation2 + $0xd1] sm:$0x1] %vm792_vm3, %v3042_v0  ;;  %v650_v29 = vpop.f32.mrf.mxu1 }
 0x117   : > { %v734_v25 = vmax.f32 %v704_v20, 0.0  ;;  %v668_v26 = vmul.f32 %v3330_v48, %v554_v23  ;;  %v758_v31 = vmax.f32 %v728_v27, 0.0  ;;  %v692_v32 = vmul.f32 %v3330_v48, %v650_v29 }
 0x118   : > { %v2342_v28 = vpop.f32.mrf.mxu0  ;;  %v2390_v34 = vpop.f32.mrf.mxu1 }
 0x119   : > { %765 = vst.msk [vmem:[#allocation2 + $0x18] sm:$0xff] %vm761_vm2, %v734_v25  ;;  %v705_v30 = vadd.f32 %v3335_v50, %v668_v26  ;;  %789 = vst.msk [vmem:[#allocation2 + $0xd8] sm:$0xff] %vm761_vm2, %v758_v31  ;;  %v729_v37 = vadd.f32 %v3335_v50, %v692_v32 }
 0x11a   : > { %794 = vst.msk [vmem:[#allocation2 + $0x18] sm:$0x1] %vm792_vm3, %v3042_v0  ;;  %v557_v33 = vpop.f32.mrf.mxu0  ;;  %802 = vst.msk [vmem:[#allocation2 + $0xd8] sm:$0x1] %vm792_vm3, %v3042_v0  ;;  %v653_v39 = vpop.f32.mrf.mxu1 }
 0x11b   : > { %v735_v35 = vmax.f32 %v705_v30, 0.0  ;;  %v669_v36 = vmul.f32 %v3330_v48, %v557_v33  ;;  %v759_v41 = vmax.f32 %v729_v37, 0.0  ;;  %v693_v42 = vmul.f32 %v3330_v48, %v653_v39 }
 0x11c   : > { %v2343_v38 = vpop.f32.mrf.mxu0  ;;  %v2391_v44 = vpop.f32.mrf.mxu1 }
 0x11d   : > { %766 = vst.msk [vmem:[#allocation2 + $0x20] sm:$0xff] %vm761_vm2, %v735_v35  ;;  %v706_v40 = vadd.f32 %v3335_v50, %v669_v36  ;;  %790 = vst.msk [vmem:[#allocation2 + $0xe0] sm:$0xff] %vm761_vm2, %v759_v41  ;;  %v730_v47 = vadd.f32 %v3335_v50, %v693_v42 }
 0x11e   : > { %v562_v43 = vpop.f32.mrf.mxu0 }
 0x11f   : > { %v736_v45 = vmax.f32 %v706_v40, 0.0  ;;  %v670_v46 = vmul.f32 %v3330_v48, %v562_v43  ;;  %v760_v52 = vmax.f32 %v730_v47, 0.0 }
 0x120   : > { %v2346_v49 = vpop.f32.mrf.mxu0 }
 0x121   : > { %767 = vst.msk [vmem:[#allocation2 + $0x28] sm:$0xff] %vm761_vm2, %v736_v45  ;;  %v707_v51 = vadd.f32 %v3335_v50, %v670_v46  ;;  %791 = vst.msk [vmem:[#allocation2 + $0xe8] sm:$0xff] %vm761_vm2, %v760_v52 }
 0x122   : > { %804 = vst.msk [vmem:[#allocation2 + $0x29] sm:$0x1] %vm792_vm3, %v3042_v0  ;;  %v565_v53 = vpop.f32.mrf.mxu0  ;;  %812 = vst.msk [vmem:[#allocation2 + $0xe9] sm:$0x1] %vm792_vm3, %v3042_v0 }
 0x123   : > { %v737_v54 = vmax.f32 %v707_v51, 0.0  ;;  %v671_v55 = vmul.f32 %v3330_v48, %v565_v53 }
 0x124   : > { %v2347_v56 = vpop.f32.mrf.mxu0 }
 0x125   : > { %768 = vst.msk [vmem:[#allocation2 + $0x30] sm:$0xff] %vm761_vm2, %v737_v54  ;;  %v708_v57 = vadd.f32 %v3335_v50, %v671_v55 }
 0x126   : > { %795 = vst.msk [vmem:[#allocation2 + $0x30] sm:$0x1] %vm792_vm3, %v3042_v0  ;;  %v570_v58 = vpop.f32.mrf.mxu0 }
 0x127   : > { %v738_v59 = vmax.f32 %v708_v57, 0.0  ;;  %v672_v60 = vmul.f32 %v3330_v48, %v570_v58 }
 0x128   : > { %v2350_v61 = vpop.f32.mrf.mxu0 }
 0x129   : > { %769 = vst.msk [vmem:[#allocation2 + $0x38] sm:$0xff] %vm761_vm2, %v738_v59  ;;  %v709_v62 = vadd.f32 %v3335_v50, %v672_v60 }
 0x12a   : > { %v573_v63 = vpop.f32.mrf.mxu0 }
 0x12b   : > { %v739_v1 = vmax.f32 %v709_v62, 0.0  ;;  %v673_v2 = vmul.f32 %v3330_v48, %v573_v63 }
 0x12c   : > { %v2351_v3 = vpop.f32.mrf.mxu0 }
 0x12d   : > { %770 = vst.msk [vmem:[#allocation2 + $0x40] sm:$0xff] %vm761_vm2, %v739_v1  ;;  %v710_v4 = vadd.f32 %v3335_v50, %v673_v2 }
 0x12e   : > { %805 = vst.msk [vmem:[#allocation2 + $0x41] sm:$0x1] %vm792_vm3, %v3042_v0  ;;  %v578_v5 = vpop.f32.mrf.mxu0 }
 0x12f   : > { %v740_v6 = vmax.f32 %v710_v4, 0.0  ;;  %v674_v7 = vmul.f32 %v3330_v48, %v578_v5 }
 0x130   : > { %v2354_v8 = vpop.f32.mrf.mxu0 }
 0x131   : > { %771 = vst.msk [vmem:[#allocation2 + $0x48] sm:$0xff] %vm761_vm2, %v740_v6  ;;  %v711_v9 = vadd.f32 %v3335_v50, %v674_v7 }
 0x132   : > { %796 = vst.msk [vmem:[#allocation2 + $0x48] sm:$0x1] %vm792_vm3, %v3042_v0  ;;  %v581_v10 = vpop.f32.mrf.mxu0 }
 0x133   : > { %v741_v11 = vmax.f32 %v711_v9, 0.0  ;;  %v675_v12 = vmul.f32 %v3330_v48, %v581_v10 }
 0x134   : > { %v2355_v13 = vpop.f32.mrf.mxu0 }
 0x135   : > { %772 = vst.msk [vmem:[#allocation2 + $0x50] sm:$0xff] %vm761_vm2, %v741_v11  ;;  %v712_v14 = vadd.f32 %v3335_v50, %v675_v12 }
 0x136   : > { %v586_v15 = vpop.f32.mrf.mxu0 }
 0x137   : > { %v742_v16 = vmax.f32 %v712_v14, 0.0  ;;  %v676_v17 = vmul.f32 %v3330_v48, %v586_v15 }
 0x138   : > { %v2358_v18 = vpop.f32.mrf.mxu0 }
 0x139   : > { %773 = vst.msk [vmem:[#allocation2 + $0x58] sm:$0xff] %vm761_vm2, %v742_v16  ;;  %v713_v19 = vadd.f32 %v3335_v50, %v676_v17 }
 0x13a   : > { %806 = vst.msk [vmem:[#allocation2 + $0x59] sm:$0x1] %vm792_vm3, %v3042_v0  ;;  %v589_v20 = vpop.f32.mrf.mxu0 }
 0x13b   : > { %v743_v21 = vmax.f32 %v713_v19, 0.0  ;;  %v677_v22 = vmul.f32 %v3330_v48, %v589_v20 }
 0x13c   : > { %v2359_v23 = vpop.f32.mrf.mxu0 }
 0x13d   : > { %774 = vst.msk [vmem:[#allocation2 + $0x60] sm:$0xff] %vm761_vm2, %v743_v21  ;;  %v714_v24 = vadd.f32 %v3335_v50, %v677_v22 }
 0x13e   : > { %797 = vst.msk [vmem:[#allocation2 + $0x60] sm:$0x1] %vm792_vm3, %v3042_v0  ;;  %v594_v25 = vpop.f32.mrf.mxu0 }
 0x13f   : > { %v744_v26 = vmax.f32 %v714_v24, 0.0  ;;  %v678_v27 = vmul.f32 %v3330_v48, %v594_v25 }
 0x140   : > { %v2362_v28 = vpop.f32.mrf.mxu0 }
 0x141   : > { %775 = vst.msk [vmem:[#allocation2 + $0x68] sm:$0xff] %vm761_vm2, %v744_v26  ;;  %v715_v29 = vadd.f32 %v3335_v50, %v678_v27 }
 0x142   : > { %v597_v30 = vpop.f32.mrf.mxu0 }
 0x143   : > { %v745_v31 = vmax.f32 %v715_v29, 0.0  ;;  %v679_v32 = vmul.f32 %v3330_v48, %v597_v30 }
 0x144   : > { %v2363_v33 = vpop.f32.mrf.mxu0 }
 0x145   : > { %776 = vst.msk [vmem:[#allocation2 + $0x70] sm:$0xff] %vm761_vm2, %v745_v31  ;;  %v716_v34 = vadd.f32 %v3335_v50, %v679_v32 }
 0x146   : > { %807 = vst.msk [vmem:[#allocation2 + $0x71] sm:$0x1] %vm792_vm3, %v3042_v0  ;;  %v602_v35 = vpop.f32.mrf.mxu0 }
 0x147   : > { %v746_v36 = vmax.f32 %v716_v34, 0.0  ;;  %v680_v37 = vmul.f32 %v3330_v48, %v602_v35 }
 0x148   : > { %v2366_v38 = vpop.f32.mrf.mxu0 }
 0x149   : > { %777 = vst.msk [vmem:[#allocation2 + $0x78] sm:$0xff] %vm761_vm2, %v746_v36  ;;  %v717_v39 = vadd.f32 %v3335_v50, %v680_v37 }
 0x14a   : > { %798 = vst.msk [vmem:[#allocation2 + $0x78] sm:$0x1] %vm792_vm3, %v3042_v0  ;;  %v605_v40 = vpop.f32.mrf.mxu0 }
 0x14b   : > { %v747_v41 = vmax.f32 %v717_v39, 0.0  ;;  %v681_v42 = vmul.f32 %v3330_v48, %v605_v40 }
 0x14c   : > { %v2367_v43 = vpop.f32.mrf.mxu0 }
 0x14d   : > { %778 = vst.msk [vmem:[#allocation2 + $0x80] sm:$0xff] %vm761_vm2, %v747_v41  ;;  %v718_v44 = vadd.f32 %v3335_v50, %v681_v42 }
 0x14e   : > { %v610_v45 = vpop.f32.mrf.mxu0 }
 0x14f   : > { %v748_v46 = vmax.f32 %v718_v44, 0.0  ;;  %v682_v47 = vmul.f32 %v3330_v48, %v610_v45 }
 0x150   : > { %v2370_v49 = vpop.f32.mrf.mxu0 }
 0x151   : > { %779 = vst.msk [vmem:[#allocation2 + $0x88] sm:$0xff] %vm761_vm2, %v748_v46  ;;  %v719_v51 = vadd.f32 %v3335_v50, %v682_v47 }
 0x152   : > { %808 = vst.msk [vmem:[#allocation2 + $0x89] sm:$0x1] %vm792_vm3, %v3042_v0  ;;  %v613_v52 = vpop.f32.mrf.mxu0 }
 0x153   : > { %v749_v53 = vmax.f32 %v719_v51, 0.0  ;;  %v683_v54 = vmul.f32 %v3330_v48, %v613_v52 }
 0x154   : > { %v2371_v55 = vpop.f32.mrf.mxu0 }
 0x155   : > { %780 = vst.msk [vmem:[#allocation2 + $0x90] sm:$0xff] %vm761_vm2, %v749_v53  ;;  %v720_v56 = vadd.f32 %v3335_v50, %v683_v54 }
 0x156   : > { %799 = vst.msk [vmem:[#allocation2 + $0x90] sm:$0x1] %vm792_vm3, %v3042_v0  ;;  %v618_v57 = vpop.f32.mrf.mxu0 }
 0x157   : > { %v750_v58 = vmax.f32 %v720_v56, 0.0  ;;  %v684_v59 = vmul.f32 %v3330_v48, %v618_v57 }
 0x158   : > { %v2374_v60 = vpop.f32.mrf.mxu0 }
 0x159   : > { %781 = vst.msk [vmem:[#allocation2 + $0x98] sm:$0xff] %vm761_vm2, %v750_v58  ;;  %v721_v61 = vadd.f32 %v3335_v50, %v684_v59 }
 0x15a   : > { %v621_v62 = vpop.f32.mrf.mxu0 }
 0x15b   : > { %v751_v63 = vmax.f32 %v721_v61, 0.0  ;;  %v685_v1 = vmul.f32 %v3330_v48, %v621_v62 }
 0x15c   : > { %v2375_v2 = vpop.f32.mrf.mxu0 }
 0x15d   : > { %782 = vst.msk [vmem:[#allocation2 + $0xa0] sm:$0xff] %vm761_vm2, %v751_v63  ;;  %v722_v3 = vadd.f32 %v3335_v50, %v685_v1 }
 0x15e   : > { %809 = vst.msk [vmem:[#allocation2 + $0xa1] sm:$0x1] %vm792_vm3, %v3042_v0  ;;  %v626_v4 = vpop.f32.mrf.mxu0 }
 0x15f   : > { %v752_v5 = vmax.f32 %v722_v3, 0.0  ;;  %v686_v6 = vmul.f32 %v3330_v48, %v626_v4 }
 0x160   : > { %v2378_v7 = vpop.f32.mrf.mxu0 }
 0x161   : > { %783 = vst.msk [vmem:[#allocation2 + $0xa8] sm:$0xff] %vm761_vm2, %v752_v5  ;;  %v723_v8 = vadd.f32 %v3335_v50, %v686_v6 }
 0x162   : > { %800 = vst.msk [vmem:[#allocation2 + $0xa8] sm:$0x1] %vm792_vm3, %v3042_v0  ;;  %v629_v9 = vpop.f32.mrf.mxu0 }
 0x163   : > { %v753_v10 = vmax.f32 %v723_v8, 0.0  ;;  %v687_v11 = vmul.f32 %v3330_v48, %v629_v9 }
 0x164   : > { %v2379_v12 = vpop.f32.mrf.mxu0 }
 0x165   : > { %784 = vst.msk [vmem:[#allocation2 + $0xb0] sm:$0xff] %vm761_vm2, %v753_v10  ;;  %v724_v13 = vadd.f32 %v3335_v50, %v687_v11 }
 0x166   : > { %816 = sbr.rel (%p2236_p7) target bundleno = 366 (0x16e), region = 68 }
 0x167   : > { %v754_v14 = vmax.f32 %v724_v13, 0.0 }
 0x169   : > { %785 = vst.msk [vmem:[#allocation2 + $0xb8] sm:$0xff] %vm761_vm2, %v754_v14 }
 0x16a   : > { %810 = vst.msk [vmem:[#allocation2 + $0xb9] sm:$0x1] %vm792_vm3, %v3042_v0 }
 0x16b   : > { %v3044_v15 = vmov 0.0  }
 0x16c   : > { %817 = vst.msk [vmem:[#allocation2] sm:$0xff] %vm761_vm2, %v3044_v15  ;;  %818 = vst.msk [vmem:[#allocation2 + $0x8] sm:$0xff] %vm761_vm2, %v3044_v15 }
 0x16d   : > { %819 = vst.msk [vmem:[#allocation2 + $0x10] sm:$0xff] %vm761_vm2, %v3044_v15 }
 0x16e PF: > { %p2237_p4 = scmp.ne.s32.totalorder %s3021_s19, 1 }
 0x170   : > { %823 = sbr.rel (%p2237_p4) target bundleno = 376 (0x178), region = 72 }
 0x175   : > { %v3045_v48 = vmov 0.0  }
 0x176   : > { %825 = vst.msk [vmem:[#allocation2 + $0xd8] sm:$0xff] %vm761_vm2, %v3045_v48  ;;  %826 = vst.msk [vmem:[#allocation2 + $0xe0] sm:$0xff] %vm761_vm2, %v3045_v48 }
 0x177   : > { %827 = vst.msk [vmem:[#allocation2 + $0xe8] sm:$0xff] %vm761_vm2, %v3045_v48 }
 0x178 PF: > { %v860_v0 = vld [vmem:[#allocation2 + $0x2] sm:$0xff]  ;;  %v861_v50 = vld [vmem:[#allocation2 + $0xa] sm:$0xff]  ;;  %v862_v19 = vld [vmem:[#allocation2 + $0x1a] sm:$0xff]  ;;  %s3046_s22 = smov 16   ;;  %s3047_s15 = smov 8   ;;  %vm1689_vm4 = vcmask 1043456  }
 0x179   : > { %v844_v16 = vld [vmem:[#allocation2 + $0x1] sm:$0xff]  ;;  %v2574_v17 = vpack.i.bf16 %v861_v50, %v860_v0  ;;  %v845_v18 = vld [vmem:[#allocation2 + $0x9] sm:$0xff]  ;;  %v846_v22 = vld [vmem:[#allocation2 + $0x19] sm:$0xff]  ;;  %s3048_s20 = smov 24   ;;  %s3049_s30 = smov 32   ;;  %vm1502_vm5 = vcmask 130048  }
 0x17a   : > { %v863_v20 = vld [vmem:[#allocation2 + $0x22] sm:$0xff]  ;;  %v2564_v21 = vpack.i.bf16 %v845_v18, %v844_v16  ;;  %v3480_v26 = vld [vmem:[#allocation2 + $0x30] sm:$0xff]  ;;  %v3482_v27 = vld [vmem:[#allocation2 + $0x38] sm:$0xff]  ;;  %s3050_s16 = smov 40   ;;  %s3051_s27 = smov 48   ;;  %vm1519_vm6 = vcmask 195584  }
 0x17b   : > { %v847_v23 = vld [vmem:[#allocation2 + $0x21] sm:$0xff]  ;;  %2575 = vrot.lane.b32.xlu1 %v2574_v17, %s3046_s22  ;;  %v2579_v24 = vpack.i.bf16 %v863_v20, %v862_v19  ;;  %v3484_v28 = vld [vmem:[#allocation2 + $0x18] sm:$0xff]  ;;  %v2589_v30 = vpack.i.bf16 %v3482_v27, %v3480_v26  ;;  %v3500_v39 = vld [vmem:[#allocation2 + $0x50] sm:$0xff]  ;;  %s3052_s28 = smov 56   ;;  %s3053_s29 = smov 64   ;;  %vm1552_vm7 = vcmask 326656  }
 0x17c   : > { %2565 = vrot.lane.b32.xlu0 %v2564_v21, %s3047_s15  ;;  %v2569_v25 = vpack.i.bf16 %v847_v23, %v846_v22  ;;  %v3486_v29 = vld [vmem:[#allocation2 + $0x20] sm:$0xff]  ;;  %v895_v32 = vld [vmem:[#allocation2 + $0x31] sm:$0xff]  ;;  %v3498_v38 = vld [vmem:[#allocation2 + $0x48] sm:$0xff]  ;;  %vm1569_vm8 = vcmask 392192   ;;  %vm1586_vm9 = vcmask 457728   ;;  %vm1603_vm10 = vcmask 523264  }
 0x17d   : > { %v2584_v31 = vpack.i.bf16 %v3486_v29, %v3484_v28  ;;  %v896_v33 = vld [vmem:[#allocation2 + $0x39] sm:$0xff]  ;;  %v2619_v40 = vpack.i.bf16 %v3500_v39, %v3498_v38  ;;  %v944_v41 = vld [vmem:[#allocation2 + $0x49] sm:$0xff]  ;;  %v945_v42 = vld [vmem:[#allocation2 + $0x51] sm:$0xff]  ;;  %vm1664_vm11 = vcmask 588800   ;;  %s4031_s24 = sld [smem:[#allocation18_spill]] }
 0x17e   : > { %v2599_v34 = vpack.i.bf16 %v896_v33, %v895_v32  ;;  %v911_v35 = vld [vmem:[#allocation2 + $0x32] sm:$0xff]  ;;  %v912_v36 = vld [vmem:[#allocation2 + $0x3a] sm:$0xff]  ;;  %v2629_v46 = vpack.i.bf16 %v945_v42, %v944_v41  ;;  %v2887_v49 = vld [vmem:[%s4001_s4 + $0x8] sm:$0xff]   ;;  %s4033_s25 = sld [smem:[#allocation19_spill]] }
 0x17f   : > { %2580 = vrot.lane.b32.xlu1 %v2579_v24, %s3046_s22  ;;  %v2609_v37 = vpack.i.bf16 %v912_v36, %v911_v35  ;;  %v2884_v43 = vld [vmem:[%s4001_s4 + $0x20] ss:$0 sps:$4 sm:$0xff]   ;;  %v2885_v44 = vld [vmem:[%s4001_s4 + $0x18] sm:$0xff]   ;;  %v2886_v47 = vld [vmem:[%s4001_s4 + $0x10] sm:$0xff]  }
 0x180   : > { %2570 = vrot.lane.b32.xlu0 %v2569_v25, %s3047_s15  ;;  %2440 = vmatprep.subr.msk.bf16.mxu1 %vm1689_vm4, %v2884_v43  ;;  %v1691_v45 = vsel %vm1689_vm4, %v2884_v43, 0  ;;  %v960_v51 = vld [vmem:[#allocation2 + $0x4a] sm:$0xff]  ;;  %v961_v52 = vld [vmem:[#allocation2 + $0x52] sm:$0xff]  ;;  %v2888_v54 = vld [vmem:[%s4001_s4] sm:$0xff]  }
 0x181   : > { %2393 = vmatpush3.bf16.msra.mxu1 %v1691_v45  ;;  %v2644_v53 = vpack.i.bf16 %v961_v52, %v960_v51  ;;  %v3531_v55 = vld [vmem:[#allocation2 + $0x60] sm:$0xff]  ;;  %v3533_v56 = vld [vmem:[#allocation2 + $0x68] sm:$0xff]  ;;  %v3543_v1 = vld [vmem:[#allocation2 + $0x78] sm:$0xff] }
 0x182   : > { %2394 = vmatprep.subr.bf16.mxu1 %v2885_v44  ;;  %v2669_v57 = vpack.i.bf16 %v3533_v56, %v3531_v55  ;;  %v899_v58 = vld [vmem:[#allocation2 + $0x61] sm:$0xff]  ;;  %v900_v59 = vld [vmem:[#allocation2 + $0x69] sm:$0xff]  ;;  %v948_v4 = vld [vmem:[#allocation2 + $0x79] sm:$0xff] }
 0x183   : > { %2590 = vrot.lane.b32.xlu1 %v2589_v30, %s3048_s20  ;;  %v2679_v60 = vpack.i.bf16 %v900_v59, %v899_v58  ;;  %v915_v61 = vld [vmem:[#allocation2 + $0x62] sm:$0xff]  ;;  %v916_v62 = vld [vmem:[#allocation2 + $0x6a] sm:$0xff]  ;;  %v964_v7 = vld [vmem:[#allocation2 + $0x7a] sm:$0xff] }
 0x184   : > { %2585 = vrot.lane.b32.xlu0 %v2584_v31, %s3048_s20  ;;  %v2689_v63 = vpack.i.bf16 %v916_v62, %v915_v61  ;;  %v3545_v2 = vld [vmem:[#allocation2 + $0x80] sm:$0xff]  ;;  %v3559_v10 = vld [vmem:[#allocation2 + $0x90] sm:$0xff]  ;;  %v3561_v11 = vld [vmem:[#allocation2 + $0x98] sm:$0xff] }
 0x185   : > { %2395 = vmatpush3.bf16.msra.mxu1 %v2885_v44  ;;  %v2699_v3 = vpack.i.bf16 %v3545_v2, %v3543_v1  ;;  %v949_v5 = vld [vmem:[#allocation2 + $0x81] sm:$0xff]  ;;  %v2749_v12 = vpack.i.bf16 %v3561_v11, %v3559_v10  ;;  %v903_v13 = vld [vmem:[#allocation2 + $0x91] sm:$0xff]  ;;  %v904_v14 = vld [vmem:[#allocation2 + $0x99] sm:$0xff] }
 0x186   : > { %2396 = vmatprep.subr.bf16.mxu1 %v2886_v47  ;;  %v2709_v6 = vpack.i.bf16 %v949_v5, %v948_v4  ;;  %v965_v8 = vld [vmem:[#allocation2 + $0x82] sm:$0xff]  ;;  %v2759_v15 = vpack.i.bf16 %v904_v14, %v903_v13  ;;  %v919_v48 = vld [vmem:[#allocation2 + $0x92] sm:$0xff]  ;;  %v920_v0 = vld [vmem:[#allocation2 + $0x9a] sm:$0xff] }
 0x187   : > { %2600 = vrot.lane.b32.xlu1 %v2599_v34, %s3049_s30  ;;  %v2724_v9 = vpack.i.bf16 %v965_v8, %v964_v7  ;;  %v2769_v50 = vpack.i.bf16 %v920_v0, %v919_v48  ;;  %v3571_v16 = vld [vmem:[#allocation2 + $0xa8] sm:$0xff]  ;;  %v3573_v17 = vld [vmem:[#allocation2 + $0xb0] sm:$0xff]  ;;  %v941_v41 = vld [vmem:[#allocation2 + $0xe0] sm:$0xff] }
 0x188   : > { %2595 = vrot.lane.b32.xlu0 %v2569_v25, %s3049_s30  ;;  %v2779_v18 = vpack.i.bf16 %v3573_v17, %v3571_v16  ;;  %v952_v19 = vld [vmem:[#allocation2 + $0xa9] sm:$0xff]  ;;  %v953_v20 = vld [vmem:[#allocation2 + $0xb1] sm:$0xff]  ;;  %v891_v25 = vld [vmem:[#allocation2 + $0xc0] sm:$0xff] }
 0x189   : > { %2397 = vmatpush3.bf16.msra.mxu1 %v2886_v47  ;;  %v2789_v21 = vpack.i.bf16 %v953_v20, %v952_v19  ;;  %v968_v22 = vld [vmem:[#allocation2 + $0xaa] sm:$0xff]  ;;  %v969_v23 = vld [vmem:[#allocation2 + $0xb2] sm:$0xff]  ;;  %v907_v32 = vld [vmem:[#allocation2 + $0xc1] sm:$0xff] }
 0x18a   : > { %2398 = vmatprep.subr.bf16.mxu1 %v2887_v49  ;;  %v908_v33 = vld [vmem:[#allocation2 + $0xc9] sm:$0xff]  ;;  %v956_v43 = vld [vmem:[#allocation2 + $0xd9] sm:$0xff]  ;;  %v957_v44 = vld [vmem:[#allocation2 + $0xe1] sm:$0xff] }
 0x18b   : > { %2610 = vrot.lane.b32.xlu1 %v2609_v37, %s3050_s16  ;;  %v923_v35 = vld [vmem:[#allocation2 + $0xc2] sm:$0xff]  ;;  %v924_v36 = vld [vmem:[#allocation2 + $0xca] sm:$0xff]  ;;  %v2869_v47 = vpack.i.bf16 %v957_v44, %v956_v43 }
 0x18c   : > { %2605 = vrot.lane.b32.xlu0 %v2579_v24, %s3050_s16  ;;  %v2804_v24 = vpack.i.bf16 %v969_v23, %v968_v22  ;;  %v973_v51 = vld [vmem:[#allocation2 + $0xe2] sm:$0xff] }
 0x18d   : > { %2399 = vmatpush3.bf16.msra.mxu1 %v2887_v49  ;;  %v972_v49 = vld [vmem:[#allocation2 + $0xda] sm:$0xff]  ;;  %v829_v4 = vld [vmem:[#allocation2 + $0x8] sm:$0xff] }
 0x18e   : > { %2400 = vmatprep.subr.bf16.mxu1 %v2888_v54 }
 0x18f   : > { %2620 = vrot.lane.b32.xlu1 %v2619_v40, %s3051_s27 }
 0x190   : > { %2615 = vrot.lane.b32.xlu0 %v2589_v30, %s3051_s27  ;;  %v892_v30 = vld [vmem:[#allocation2 + $0xc8] sm:$0xff] }
 0x191   : > { %2401 = vmatpush3.bf16.msra.mxu1 %v2888_v54  ;;  %v2829_v31 = vpack.i.bf16 %v892_v30, %v891_v25  ;;  %v2879_v54 = vpack.i.bf16 %v973_v51, %v972_v49 }
 0x193   : > { %2630 = vrot.lane.b32.xlu1 %v2629_v46, %s3052_s28 }
 0x194   : > { %2625 = vrot.lane.b32.xlu0 %v2599_v34, %s3052_s28 }
 0x197   : > { %2640 = vrot.lane.b32.xlu1 %v2599_v34, %s3047_s15  ;;  %v2839_v34 = vpack.i.bf16 %v908_v33, %v907_v32 }
 0x198   : > { %2635 = vrot.lane.b32.xlu0 %v2609_v37, %s3053_s29 }
 0x19b   : > { %2650 = vrot.lane.b32.xlu1 %v2629_v46, %s3047_s15 }
 0x19c   : > { %2645 = vrot.lane.b32.xlu0 %v2644_v53, %s3053_s29 }
 0x19f   : > { %2660 = vrot.lane.b32.xlu1 %v2644_v53, %s3046_s22 }
 0x1a0   : > { %2655 = vrot.lane.b32.xlu0 %v2609_v37, %s3046_s22  ;;  %v2849_v37 = vpack.i.bf16 %v924_v36, %v923_v35 }
 0x1a3   : > { %2670 = vrot.lane.b32.xlu1 %v2669_v57, %s3048_s20 }
 0x1a4   : > { %2665 = vrot.lane.b32.xlu0 %v2619_v40, %s3048_s20  ;;  %v940_v40 = vld [vmem:[#allocation2 + $0xd8] sm:$0xff] }
 0x1a5   : > { %v2859_v42 = vpack.i.bf16 %v941_v41, %v940_v40 }
 0x1a7   : > { %2680 = vrot.lane.b32.xlu1 %v2679_v60, %s3049_s30 }
 0x1a8   : > { %2675 = vrot.lane.b32.xlu0 %v2629_v46, %s3049_s30 }
 0x1ab   : > { %2690 = vrot.lane.b32.xlu1 %v2689_v63, %s3050_s16 }
 0x1ac   : > { %2685 = vrot.lane.b32.xlu0 %v2644_v53, %s3050_s16 }
 0x1af   : > { %2700 = vrot.lane.b32.xlu1 %v2699_v3, %s3051_s27 }
 0x1b0   : > { %2695 = vrot.lane.b32.xlu0 %v2669_v57, %s3051_s27 }
 0x1b3   : > { %2710 = vrot.lane.b32.xlu1 %v2709_v6, %s3052_s28 }
 0x1b4   : > { %2705 = vrot.lane.b32.xlu0 %v2679_v60, %s3052_s28 }
 0x1b7   : > { %2720 = vrot.lane.b32.xlu1 %v2679_v60, %s3047_s15 }
 0x1b8   : > { %2715 = vrot.lane.b32.xlu0 %v2689_v63, %s3053_s29 }
 0x1bb   : > { %2730 = vrot.lane.b32.xlu1 %v2709_v6, %s3047_s15 }
 0x1bc   : > { %2725 = vrot.lane.b32.xlu0 %v2724_v9, %s3053_s29 }
 0x1bf   : > { %2740 = vrot.lane.b32.xlu1 %v2724_v9, %s3046_s22 }
 0x1c0   : > { %2735 = vrot.lane.b32.xlu0 %v2689_v63, %s3046_s22 }
 0x1c3   : > { %2750 = vrot.lane.b32.xlu1 %v2749_v12, %s3048_s20 }
 0x1c4   : > { %2745 = vrot.lane.b32.xlu0 %v2699_v3, %s3048_s20  ;;  %v828_v3 = vld [vmem:[#allocation2] sm:$0xff] }
 0x1c7   : > { %2760 = vrot.lane.b32.xlu1 %v2759_v15, %s3049_s30 }
 0x1c8   : > { %2755 = vrot.lane.b32.xlu0 %v2709_v6, %s3049_s30 }
 0x1cb   : > { %2770 = vrot.lane.b32.xlu1 %v2769_v50, %s3050_s16 }
 0x1cc   : > { %2765 = vrot.lane.b32.xlu0 %v2724_v9, %s3050_s16 }
 0x1cf   : > { %2780 = vrot.lane.b32.xlu1 %v2779_v18, %s3051_s27 }
 0x1d0   : > { %2775 = vrot.lane.b32.xlu0 %v2749_v12, %s3051_s27 }
 0x1d3   : > { %2790 = vrot.lane.b32.xlu1 %v2789_v21, %s3052_s28 }
 0x1d4   : > { %2785 = vrot.lane.b32.xlu0 %v2759_v15, %s3052_s28 }
 0x1d7   : > { %2800 = vrot.lane.b32.xlu1 %v2759_v15, %s3047_s15 }
 0x1d8   : > { %2795 = vrot.lane.b32.xlu0 %v2769_v50, %s3053_s29 }
 0x1db   : > { %2810 = vrot.lane.b32.xlu1 %v2789_v21, %s3047_s15 }
 0x1dc   : > { %2805 = vrot.lane.b32.xlu0 %v2804_v24, %s3053_s29 }
 0x1df   : > { %2820 = vrot.lane.b32.xlu1 %v2804_v24, %s3046_s22 }
 0x1e0   : > { %2815 = vrot.lane.b32.xlu0 %v2769_v50, %s3046_s22  ;;  %s4032_s22 = sld [smem:[#allocation11_spill]] }
 0x1e3   : > { %2830 = vrot.lane.b32.xlu1 %v2829_v31, %s3048_s20 }
 0x1e4   : > { %2825 = vrot.lane.b32.xlu0 %v2779_v18, %s3048_s20  ;;  %s2288_s20 = sshll.u32 %s3021_s19, 4 }
 0x1e7   : > { %2840 = vrot.lane.b32.xlu1 %v2839_v34, %s3049_s30 }
 0x1e8   : > { %2835 = vrot.lane.b32.xlu0 %v2789_v21, %s3049_s30  ;;  %s2284_s30 = sshll.u32 %s4032_s22, 5 }
 0x1eb   : > { %2850 = vrot.lane.b32.xlu1 %v2849_v37, %s3050_s16 }
 0x1ec   : > { %2845 = vrot.lane.b32.xlu0 %v2804_v24, %s3050_s16  ;;  %s2112_s16 = sadd.s32 %s2288_s20, %s2284_s30 }
 0x1ed   : > { %v2576_v45 = vpop.permute.xlu1 %2575  ;;  %s2285_s19 = sshll.u32 %s2112_s16, 7 }
 0x1ee   : > { %v2566_v46 = vpop.permute.xlu0 %2565  ;;  %v2578_v8 = vunpack.i.h.bf16 %v2576_v45  ;;  %v2577_v9 = vunpack.i.l.bf16 %v2576_v45 }
 0x1ef   : > { %2860 = vrot.lane.b32.xlu1 %v2859_v42, %s3051_s27  ;;  %v2568_v61 = vunpack.i.h.bf16 %v2566_v46  ;;  %v2567_v62 = vunpack.i.l.bf16 %v2566_v46 }
 0x1f0   : > { %2855 = vrot.lane.b32.xlu0 %v2829_v31, %s3051_s27  ;;  %s2115_s27 = sshll.u32 %s3468_s10, 4  ;;  %s3930_s27 = int_to_ptr.vmem [resolvable:$true] %s2115_s27 }
 0x1f1   : > { %v2581_v52 = vpop.permute.xlu1 %2580  ;;  %v1486_v12 = vsel %vm761_vm2, %v828_v3, %v2567_v62  ;;  %v1487_v13 = vsel %vm761_vm2, %v829_v4, %v2568_v61  ;;  %s2917_s21 = scalar_lea.vmem %s3930_s27, 2048 }
 0x1f2   : > { %v2571_v53 = vpop.permute.xlu0 %2570  ;;  %v2583_v14 = vunpack.i.h.bf16 %v2581_v52  ;;  %v2582_v15 = vunpack.i.l.bf16 %v2581_v52  ;;  %v1503_v23 = vsel %vm1502_vm5, %v1486_v12, %v2577_v9  ;;  %v1504_v24 = vsel %vm1502_vm5, %v1487_v13, %v2578_v8  ;;  %p2918_p5 = scmp.ne.s32.totalorder %s3930_s27, %s2917_s21 }
 0x1f3   : > { %2870 = vrot.lane.b32.xlu1 %v2869_v47, %s3052_s28  ;;  %v2573_v5 = vunpack.i.h.bf16 %v2571_v53  ;;  %v2572_v6 = vunpack.i.l.bf16 %v2571_v53 }
 0x1f4   : > { %2865 = vrot.lane.b32.xlu0 %v2839_v34, %s3052_s28  ;;  %p2919_p8 = pnand %p2918_p5, %p3193_p12 }
 0x1f5   : > { %v2591_v57 = vpop.permute.xlu1 %2590  ;;  %v1488_v0 = vsel %vm761_vm2, %v3484_v28, %v2572_v6  ;;  %v1489_v50 = vsel %vm761_vm2, %v3486_v29, %v2573_v5 }
 0x1f6   : > { %v2586_v58 = vpop.permute.xlu0 %2585  ;;  %v2593_v18 = vunpack.i.h.bf16 %v2591_v57  ;;  %v2592_v19 = vunpack.i.l.bf16 %v2591_v57  ;;  %v1505_v25 = vsel %vm1502_vm5, %v1488_v0, %v2582_v15  ;;  %v1506_v28 = vsel %vm1502_vm5, %v1489_v50, %v2583_v14  ;;  %p2920_p9 = pneg %p2919_p8 }
 0x1f7   : > { %2880 = vrot.lane.b32.xlu1 %v2879_v54, %s3053_s29  ;;  %v2588_v21 = vunpack.i.h.bf16 %v2586_v58  ;;  %v2587_v22 = vunpack.i.l.bf16 %v2586_v58 }
 0x1f8   : > { %2875 = vrot.lane.b32.xlu0 %v2849_v37, %s3053_s29  ;;  %v1522_v32 = vsel %vm1519_vm6, %v1505_v25, %v2592_v19  ;;  %v1523_v33 = vsel %vm1519_vm6, %v1506_v28, %v2593_v18  ;;  %s3926_s29 = scalar_lea.hbm %s4033_s25, %s2285_s19 }
 0x1f9   : > { %v3601_v59 = vpop.permute.xlu1 %2600  ;;  %v1520_v37 = vsel %vm1519_vm6, %v1503_v23, %v2587_v22  ;;  %v1521_v40 = vsel %vm1519_vm6, %v1504_v24, %v2588_v21 }
 0x1fa   : > { %v2596_v60 = vpop.permute.xlu0 %2595  ;;  %v2603_v43 = vunpack.i.h.bf16 %v3601_v59  ;;  %v2602_v44 = vunpack.i.l.bf16 %v3601_v59 }
 0x1fb   : > { %v2598_v30 = vunpack.i.h.bf16 %v2596_v60  ;;  %v2597_v31 = vunpack.i.l.bf16 %v2596_v60 }
 0x1fc   : > { %v1538_v8 = vsel %vm458_vm1, %v1522_v32, %v2602_v44  ;;  %v1539_v9 = vsel %vm458_vm1, %v1523_v33, %v2603_v43 }
 0x1fd   : > { %v3603_v63 = vpop.permute.xlu1 %2610  ;;  %v1536_v47 = vsel %vm458_vm1, %v1520_v37, %v2597_v31  ;;  %v1537_v49 = vsel %vm458_vm1, %v1521_v40, %v2598_v30 }
 0x1fe   : > { %v2606_v7 = vpop.permute.xlu0 %2605  ;;  %v2613_v51 = vunpack.i.h.bf16 %v3603_v63  ;;  %v2612_v52 = vunpack.i.l.bf16 %v3603_v63 }
 0x1ff   : > { %v2608_v34 = vunpack.i.h.bf16 %v2606_v7  ;;  %v2607_v35 = vunpack.i.l.bf16 %v2606_v7 }
 0x200   : > { %v1555_v15 = vsel %vm1552_vm7, %v1538_v8, %v2612_v52 }
 0x201   : > { %v3607_v48 = vpop.permute.xlu1 %2620  ;;  %v1553_v54 = vsel %vm1552_vm7, %v1536_v47, %v2607_v35  ;;  %v1554_v57 = vsel %vm1552_vm7, %v1537_v49, %v2608_v34 }
 0x202   : > { %v2616_v20 = vpop.permute.xlu0 %2615  ;;  %v2623_v58 = vunpack.i.h.bf16 %v3607_v48  ;;  %v2622_v60 = vunpack.i.l.bf16 %v3607_v48  ;;  %v1556_v48 = vsel %vm1552_vm7, %v1539_v9, %v2613_v51 }
 0x203   : > { %v2618_v41 = vunpack.i.h.bf16 %v2616_v20  ;;  %v2617_v42 = vunpack.i.l.bf16 %v2616_v20 }
 0x204   : > { %v1572_v18 = vsel %vm1569_vm8, %v1555_v15, %v2622_v60  ;;  %v1573_v19 = vsel %vm1569_vm8, %v1556_v48, %v2623_v58 }
 0x205   : > { %v2631_v29 = vpop.permute.xlu1 %2630  ;;  %v1570_v61 = vsel %vm1569_vm8, %v1553_v54, %v2617_v42  ;;  %v1571_v62 = vsel %vm1569_vm8, %v1554_v57, %v2618_v41 }
 0x206   : > { %v2626_v36 = vpop.permute.xlu0 %2625  ;;  %v2633_v5 = vunpack.i.h.bf16 %v2631_v29  ;;  %v2632_v6 = vunpack.i.l.bf16 %v2631_v29 }
 0x207   : > { %v2628_v45 = vunpack.i.h.bf16 %v2626_v36  ;;  %v2627_v46 = vunpack.i.l.bf16 %v2626_v36 }
 0x208   : > { %v1589_v22 = vsel %vm1586_vm9, %v1572_v18, %v2632_v6  ;;  %v1590_v23 = vsel %vm1586_vm9, %v1573_v19, %v2633_v5 }
 0x209   : > { %v2641_v53 = vpop.permute.xlu1 %2640  ;;  %v1587_v63 = vsel %vm1586_vm9, %v1570_v61, %v2627_v46  ;;  %v1588_v7 = vsel %vm1586_vm9, %v1571_v62, %v2628_v45 }
 0x20a   : > { %v2636_v59 = vpop.permute.xlu0 %2635  ;;  %v2643_v41 = vunpack.i.h.bf16 %v2641_v53  ;;  %v2642_v42 = vunpack.i.l.bf16 %v2641_v53 }
 0x20b   : > { %v2638_v3 = vunpack.i.h.bf16 %v2636_v59  ;;  %v2637_v4 = vunpack.i.l.bf16 %v2636_v59 }
 0x20c   : > { %v1490_v59 = vsel %vm761_vm2, %v3480_v26, %v2642_v42  ;;  %v1491_v53 = vsel %vm761_vm2, %v3482_v27, %v2643_v41 }
 0x20d   : > { %v2651_v12 = vpop.permute.xlu1 %2650  ;;  %v1604_v13 = vsel %vm1603_vm10, %v1587_v63, %v2637_v4  ;;  %v1605_v14 = vsel %vm1603_vm10, %v1588_v7, %v2638_v3 }
 0x20e   : > { %v2646_v0 = vpop.permute.xlu0 %2645  ;;  %v1620_v50 = vpack.c.bf16 %v1605_v14, %v1604_v13  ;;  %v2653_v37 = vunpack.i.h.bf16 %v2651_v12  ;;  %v2652_v40 = vunpack.i.l.bf16 %v2651_v12 }
 0x20f   : > { %v2648_v20 = vunpack.i.h.bf16 %v2646_v0  ;;  %v2647_v21 = vunpack.i.l.bf16 %v2646_v0 }
 0x210   : > { %2402 = vmatprep.mubr.msk.bf16.mxu1 %vm1664_vm11, %v1620_v50  ;;  %v1492_v54 = vsel %vm761_vm2, %v3498_v38, %v2652_v40  ;;  %v1493_v57 = vsel %vm761_vm2, %v3500_v39, %v2653_v37 }
 0x211   : > { %v1606_v24 = vsel %vm1603_vm10, %v1589_v22, %v2647_v21  ;;  %v1607_v25 = vsel %vm1603_vm10, %v1590_v23, %v2648_v20  ;;  %v2661_v28 = vpop.permute.xlu1 %2660 }
 0x212   : > { %v1621_v30 = vpack.c.bf16 %v1607_v25, %v1606_v24  ;;  %v2656_v31 = vpop.permute.xlu0 %2655  ;;  %v2663_v43 = vunpack.i.h.bf16 %v2661_v28  ;;  %v2662_v44 = vunpack.i.l.bf16 %v2661_v28 }
 0x213   : > { %v2658_v45 = vunpack.i.h.bf16 %v2656_v31  ;;  %v2657_v46 = vunpack.i.l.bf16 %v2656_v31 }
 0x214   : > { %2403 = vmatmul.mubr.msk.bf16.vlgmr.msra.gmra.mxu1 %vm1664_vm11, %v1621_v30  ;;  %v1509_v61 = vsel %vm1502_vm5, %v1492_v54, %v2662_v44  ;;  %v1510_v62 = vsel %vm1502_vm5, %v1493_v57, %v2663_v43 }
 0x215   : > { %v2671_v29 = vpop.permute.xlu1 %2670  ;;  %v1507_v3 = vsel %vm1502_vm5, %v1490_v59, %v2657_v46  ;;  %v1508_v4 = vsel %vm1502_vm5, %v1491_v53, %v2658_v45 }
 0x216   : > { %v2666_v32 = vpop.permute.xlu0 %2665  ;;  %v2673_v49 = vunpack.i.h.bf16 %v2671_v29  ;;  %v2672_v51 = vunpack.i.l.bf16 %v2671_v29 }
 0x217   : > { %v2668_v58 = vunpack.i.h.bf16 %v2666_v32  ;;  %v2667_v60 = vunpack.i.l.bf16 %v2666_v32 }
 0x218   : > { %v1526_v39 = vsel %vm1519_vm6, %v1509_v61, %v2672_v51  ;;  %v1527_v63 = vsel %vm1519_vm6, %v1510_v62, %v2673_v49 }
 0x219   : > { %v3649_v33 = vpop.permute.xlu1 %2680  ;;  %v1524_v27 = vsel %vm1519_vm6, %v1507_v3, %v2667_v60  ;;  %v1525_v9 = vsel %vm1519_vm6, %v1508_v4, %v2668_v58 }
 0x21a   : > { %v2676_v34 = vpop.permute.xlu0 %2675  ;;  %v2683_v14 = vunpack.i.h.bf16 %v3649_v33  ;;  %v2682_v15 = vunpack.i.l.bf16 %v3649_v33 }
 0x21b   : > { %v2678_v38 = vunpack.i.h.bf16 %v2676_v34  ;;  %v2677_v5 = vunpack.i.l.bf16 %v2676_v34 }
 0x21c   : > { %v1542_v37 = vsel %vm458_vm1, %v1526_v39, %v2682_v15  ;;  %v1543_v40 = vsel %vm458_vm1, %v1527_v63, %v2683_v14 }
 0x21d   : > { %v3651_v35 = vpop.permute.xlu1 %2690  ;;  %v1540_v50 = vsel %vm458_vm1, %v1524_v27, %v2677_v5  ;;  %v1541_v18 = vsel %vm458_vm1, %v1525_v9, %v2678_v38 }
 0x21e   : > { %v2686_v36 = vpop.permute.xlu0 %2685  ;;  %v2693_v19 = vunpack.i.h.bf16 %v3651_v35  ;;  %v2692_v20 = vunpack.i.l.bf16 %v3651_v35 }
 0x21f   : > { %v2688_v7 = vunpack.i.h.bf16 %v2686_v36  ;;  %v2687_v26 = vunpack.i.l.bf16 %v2686_v36 }
 0x220   : > { %v1559_v44 = vsel %vm1552_vm7, %v1542_v37, %v2692_v20  ;;  %v1560_v45 = vsel %vm1552_vm7, %v1543_v40, %v2693_v19 }
 0x221   : > { %v2701_v47 = vpop.permute.xlu1 %2700  ;;  %v1557_v22 = vsel %vm1552_vm7, %v1540_v50, %v2687_v26  ;;  %v1558_v23 = vsel %vm1552_vm7, %v1541_v18, %v2688_v7 }
 0x222   : > { %v2696_v52 = vpop.permute.xlu0 %2695  ;;  %v2703_v24 = vunpack.i.h.bf16 %v2701_v47  ;;  %v2702_v25 = vunpack.i.l.bf16 %v2701_v47 }
 0x223   : > { %v2698_v12 = vunpack.i.h.bf16 %v2696_v52  ;;  %v2697_v13 = vunpack.i.l.bf16 %v2696_v52 }
 0x224   : > { %v1576_v49 = vsel %vm1569_vm8, %v1559_v44, %v2702_v25  ;;  %v1577_v51 = vsel %vm1569_vm8, %v1560_v45, %v2703_v24 }
 0x225   : > { %v2711_v6 = vpop.permute.xlu1 %2710  ;;  %v1574_v30 = vsel %vm1569_vm8, %v1557_v22, %v2697_v13  ;;  %v1575_v31 = vsel %vm1569_vm8, %v1558_v23, %v2698_v12 }
 0x226   : > { %v2706_v8 = vpop.permute.xlu0 %2705  ;;  %v2713_v33 = vunpack.i.h.bf16 %v2711_v6  ;;  %v2712_v34 = vunpack.i.l.bf16 %v2711_v6 }
 0x227   : > { %v2708_v48 = vunpack.i.h.bf16 %v2706_v8  ;;  %v2707_v0 = vunpack.i.l.bf16 %v2706_v8 }
 0x228   : > { %v1593_v57 = vsel %vm1586_vm9, %v1576_v49, %v2712_v34  ;;  %v1594_v58 = vsel %vm1586_vm9, %v1577_v51, %v2713_v33 }
 0x229   : > { %v2721_v21 = vpop.permute.xlu1 %2720  ;;  %v1591_v36 = vsel %vm1586_vm9, %v1574_v30, %v2707_v0  ;;  %v1592_v35 = vsel %vm1586_vm9, %v1575_v31, %v2708_v48 }
 0x22a   : > { %v2716_v28 = vpop.permute.xlu0 %2715  ;;  %v2723_v26 = vunpack.i.h.bf16 %v2721_v21  ;;  %v2722_v8 = vunpack.i.l.bf16 %v2721_v21 }
 0x22b   : > { %v2718_v29 = vunpack.i.h.bf16 %v2716_v28  ;;  %v2717_v32 = vunpack.i.l.bf16 %v2716_v28 }
 0x22c   : > { %v1494_v22 = vsel %vm761_vm2, %v3531_v55, %v2722_v8  ;;  %v1495_v21 = vsel %vm761_vm2, %v3533_v56, %v2723_v26 }
 0x22d   : > { %v1608_v41 = vsel %vm1603_vm10, %v1591_v36, %v2717_v32  ;;  %v1609_v42 = vsel %vm1603_vm10, %v1592_v35, %v2718_v29  ;;  %v2731_v43 = vpop.permute.xlu1 %2730 }
 0x22e   : > { %v1622_v46 = vpack.c.bf16 %v1609_v42, %v1608_v41  ;;  %v2726_v47 = vpop.permute.xlu0 %2725  ;;  %v2733_v63 = vunpack.i.h.bf16 %v2731_v43  ;;  %v2732_v7 = vunpack.i.l.bf16 %v2731_v43 }
 0x22f   : > { %v2728_v52 = vunpack.i.h.bf16 %v2726_v47  ;;  %v2727_v54 = vunpack.i.l.bf16 %v2726_v47 }
 0x230   : > { %2406 = vmatprep.mubr.msk.bf16.mxu1 %vm1664_vm11, %v1622_v46  ;;  %v1496_v50 = vsel %vm761_vm2, %v3543_v1, %v2732_v7  ;;  %v1497_v18 = vsel %vm761_vm2, %v3545_v2, %v2733_v63 }
 0x231   : > { %v1610_v60 = vsel %vm1603_vm10, %v1593_v57, %v2727_v54  ;;  %v1611_v59 = vsel %vm1603_vm10, %v1594_v58, %v2728_v52  ;;  %v2741_v53 = vpop.permute.xlu1 %2740 }
 0x232   : > { %v1623_v61 = vpack.c.bf16 %v1611_v59, %v1610_v60  ;;  %v2736_v62 = vpop.permute.xlu0 %2735  ;;  %v2743_v27 = vunpack.i.h.bf16 %v2741_v53  ;;  %v2742_v9 = vunpack.i.l.bf16 %v2741_v53 }
 0x233   : > { %v2738_v12 = vunpack.i.h.bf16 %v2736_v62  ;;  %v2737_v13 = vunpack.i.l.bf16 %v2736_v62 }
 0x234   : > { %2407 = vmatmul.mubr.msk.bf16.gmra.mxu1 %vm1664_vm11, %v1623_v61  ;;  %v1513_v23 = vsel %vm1502_vm5, %v1496_v50, %v2742_v9  ;;  %v1514_v24 = vsel %vm1502_vm5, %v1497_v18, %v2743_v27 }
 0x235   : > { %v2751_v3 = vpop.permute.xlu1 %2750  ;;  %v1511_v25 = vsel %vm1502_vm5, %v1494_v22, %v2737_v13  ;;  %v1512_v28 = vsel %vm1502_vm5, %v1495_v21, %v2738_v12 }
 0x236   : > { %v2746_v4 = vpop.permute.xlu0 %2745  ;;  %v2753_v15 = vunpack.i.h.bf16 %v2751_v3  ;;  %v2752_v48 = vunpack.i.l.bf16 %v2751_v3 }
 0x237   : > { %v2748_v19 = vunpack.i.h.bf16 %v2746_v4  ;;  %v2747_v20 = vunpack.i.l.bf16 %v2746_v4 }
 0x238   : > { %v1530_v2 = vsel %vm1519_vm6, %v1513_v23, %v2752_v48  ;;  %v1531_v29 = vsel %vm1519_vm6, %v1514_v24, %v2753_v15 }
 0x239   : > { %v3695_v38 = vpop.permute.xlu1 %2760  ;;  %v1528_v56 = vsel %vm1519_vm6, %v1511_v25, %v2747_v20  ;;  %v1529_v34 = vsel %vm1519_vm6, %v1512_v28, %v2748_v19 }
 0x23a   : > { %v2756_v5 = vpop.permute.xlu0 %2755  ;;  %v2763_v37 = vunpack.i.h.bf16 %v3695_v38  ;;  %v2762_v40 = vunpack.i.l.bf16 %v3695_v38 }
 0x23b   : > { %v2758_v1 = vunpack.i.h.bf16 %v2756_v5  ;;  %v2757_v30 = vunpack.i.l.bf16 %v2756_v5 }
 0x23c   : > { %v1546_v38 = vsel %vm458_vm1, %v1530_v2, %v2762_v40  ;;  %v1547_v5 = vsel %vm458_vm1, %v1531_v29, %v2763_v37 }
 0x23d   : > { %v3697_v6 = vpop.permute.xlu1 %2770  ;;  %v1544_v43 = vsel %vm458_vm1, %v1528_v56, %v2757_v30  ;;  %v1545_v44 = vsel %vm458_vm1, %v1529_v34, %v2758_v1 }
 0x23e   : > { %v2766_v39 = vpop.permute.xlu0 %2765  ;;  %v2773_v45 = vunpack.i.h.bf16 %v3697_v6  ;;  %v2772_v46 = vunpack.i.l.bf16 %v3697_v6 }
 0x23f   : > { %v2768_v32 = vunpack.i.h.bf16 %v2766_v39  ;;  %v2767_v55 = vunpack.i.l.bf16 %v2766_v39 }
 0x240   : > { %v1563_v7 = vsel %vm1552_vm7, %v1546_v38, %v2772_v46  ;;  %v1564_v26 = vsel %vm1552_vm7, %v1547_v5, %v2773_v45 }
 0x241   : > { %v2781_v14 = vpop.permute.xlu1 %2780  ;;  %v1561_v49 = vsel %vm1552_vm7, %v1544_v43, %v2767_v55  ;;  %v1562_v51 = vsel %vm1552_vm7, %v1545_v44, %v2768_v32 }
 0x242   : > { %v2776_v0 = vpop.permute.xlu0 %2775  ;;  %v2783_v52 = vunpack.i.h.bf16 %v2781_v14  ;;  %v2782_v54 = vunpack.i.l.bf16 %v2781_v14 }
 0x243   : > { %v2778_v36 = vunpack.i.h.bf16 %v2776_v0  ;;  %v2777_v35 = vunpack.i.l.bf16 %v2776_v0 }
 0x244   : > { %v1580_v9 = vsel %vm1569_vm8, %v1563_v7, %v2782_v54  ;;  %v1581_v12 = vsel %vm1569_vm8, %v1564_v26, %v2783_v52 }
 0x245   : > { %v2791_v31 = vpop.permute.xlu1 %2790  ;;  %v1578_v58 = vsel %vm1569_vm8, %v1561_v49, %v2777_v35  ;;  %v1579_v60 = vsel %vm1569_vm8, %v1562_v51, %v2778_v36  ;;  %v1860_v35 = vld [vmem:[%s4004_s7] sm:$0xf] }
 0x246   : > { %v2786_v33 = vpop.permute.xlu0 %2785  ;;  %v2793_v61 = vunpack.i.h.bf16 %v2791_v31  ;;  %v2792_v62 = vunpack.i.l.bf16 %v2791_v31  ;;  %2441 = vmatprep.subr.msk.bf16.mxu1 %vm1689_vm4, %v1860_v35 }
 0x247   : > { %v2788_v41 = vunpack.i.h.bf16 %v2786_v33  ;;  %v2787_v42 = vunpack.i.l.bf16 %v2786_v33 }
 0x248   : > { %v1597_v15 = vsel %vm1586_vm9, %v1580_v9, %v2792_v62  ;;  %v1598_v48 = vsel %vm1586_vm9, %v1581_v12, %v2793_v61 }
 0x249   : > { %v2801_v47 = vpop.permute.xlu1 %2800  ;;  %v1595_v3 = vsel %vm1586_vm9, %v1578_v58, %v2787_v42  ;;  %v1596_v4 = vsel %vm1586_vm9, %v1579_v60, %v2788_v41  ;;  %v1886_v42 = vsel %vm1689_vm4, %v1860_v35, 0  ;;  %v3787_v35 = vld [vmem:[%s4002_s5] ss:$0 sm:$0xff] }
 0x24a   : > { %v2796_v57 = vpop.permute.xlu0 %2795  ;;  %v2803_v1 = vunpack.i.h.bf16 %v2801_v47  ;;  %v2802_v30 = vunpack.i.l.bf16 %v2801_v47  ;;  %2419 = vmatpush3.bf16.msra.mxu1 %v1886_v42 }
 0x24b   : > { %v2798_v59 = vunpack.i.h.bf16 %v2796_v57  ;;  %v2797_v53 = vunpack.i.l.bf16 %v2796_v57 }
 0x24c   : > { %v1498_v43 = vsel %vm761_vm2, %v3559_v10, %v2802_v30 }
 0x24d   : > { %v1612_v6 = vsel %vm1603_vm10, %v1595_v3, %v2797_v53  ;;  %v1613_v39 = vsel %vm1603_vm10, %v1596_v4, %v2798_v59  ;;  %v2811_v63 = vpop.permute.xlu1 %2810 }
 0x24e   : > { %v1624_v8 = vpack.c.bf16 %v1613_v39, %v1612_v6  ;;  %v2806_v27 = vpop.permute.xlu0 %2805  ;;  %v2812_v25 = vunpack.i.l.bf16 %v2811_v63  ;;  %v2813_v28 = vunpack.i.h.bf16 %v2811_v63 }
 0x24f   : > { %v2808_v13 = vunpack.i.h.bf16 %v2806_v27  ;;  %v2807_v14 = vunpack.i.l.bf16 %v2806_v27 }
 0x250   : > { %2410 = vmatprep.mubr.msk.bf16.mxu1 %vm1664_vm11, %v1624_v8  ;;  %v1500_v56 = vsel %vm761_vm2, %v3571_v16, %v2812_v25  ;;  %v1501_v37 = vsel %vm761_vm2, %v3573_v17, %v2813_v28  ;;  %v1499_v16 = vsel %vm761_vm2, %v3561_v11, %v2803_v1 }
 0x251   : > { %v1614_v0 = vsel %vm1603_vm10, %v1597_v15, %v2807_v14  ;;  %v1615_v50 = vsel %vm1603_vm10, %v1598_v48, %v2808_v13  ;;  %v2821_v18 = vpop.permute.xlu1 %2820 }
 0x252   : > { %v1625_v19 = vpack.c.bf16 %v1615_v50, %v1614_v0  ;;  %v2816_v20 = vpop.permute.xlu0 %2815  ;;  %v2823_v31 = vunpack.i.h.bf16 %v2821_v18  ;;  %v2822_v2 = vunpack.i.l.bf16 %v2821_v18 }
 0x253   : > { %v2818_v32 = vunpack.i.h.bf16 %v2816_v20  ;;  %v2817_v55 = vunpack.i.l.bf16 %v2816_v20 }
 0x254   : > { %2411 = vmatmul.mubr.msk.bf16.gmra.mxu1 %vm1664_vm11, %v1625_v19  ;;  %v1517_v44 = vsel %vm1502_vm5, %v1500_v56, %v2822_v2  ;;  %v1518_v45 = vsel %vm1502_vm5, %v1501_v37, %v2823_v31 }
 0x255   : > { %v2831_v22 = vpop.permute.xlu1 %2830  ;;  %v1515_v17 = vsel %vm1502_vm5, %v1498_v43, %v2817_v55  ;;  %v1516_v47 = vsel %vm1502_vm5, %v1499_v16, %v2818_v32  ;;  %v3794_v43 = vld [vmem:[%s4003_s6] ss:$0 sm:$0xff] }
 0x256   : > { %v2826_v21 = vpop.permute.xlu0 %2825  ;;  %v2833_v34 = vunpack.i.h.bf16 %v2831_v22  ;;  %v2832_v36 = vunpack.i.l.bf16 %v2831_v22 }
 0x257   : > { %v2828_v40 = vunpack.i.h.bf16 %v2826_v21  ;;  %v2827_v41 = vunpack.i.l.bf16 %v2826_v21 }
 0x258   : > { %v1534_v54 = vsel %vm1519_vm6, %v1517_v44, %v2832_v36  ;;  %v1535_v10 = vsel %vm1519_vm6, %v1518_v45, %v2833_v34 }
 0x259   : > { %v2841_v23 = vpop.permute.xlu1 %2840  ;;  %v1532_v11 = vsel %vm1519_vm6, %v1515_v17, %v2827_v41  ;;  %v1533_v60 = vsel %vm1519_vm6, %v1516_v47, %v2828_v40 }
 0x25a   : > { %v2836_v24 = vpop.permute.xlu0 %2835  ;;  %v2843_v49 = vunpack.i.h.bf16 %v2841_v23  ;;  %v2842_v51 = vunpack.i.l.bf16 %v2841_v23 }
 0x25b   : > { %v2838_v57 = vunpack.i.h.bf16 %v2836_v24  ;;  %v2837_v58 = vunpack.i.l.bf16 %v2836_v24 }
 0x25c   : > { %v1550_v5 = vsel %vm458_vm1, %v1534_v54, %v2842_v51  ;;  %v1551_v6 = vsel %vm458_vm1, %v1535_v10, %v2843_v49 }
 0x25d   : > { %v2851_v29 = vpop.permute.xlu1 %2850  ;;  %v1548_v26 = vsel %vm458_vm1, %v1532_v11, %v2837_v58  ;;  %v1549_v8 = vsel %vm458_vm1, %v1533_v60, %v2838_v57 }
 0x25e   : > { %v2846_v33 = vpop.permute.xlu0 %2845  ;;  %v2853_v59 = vunpack.i.h.bf16 %v2851_v29  ;;  %v2852_v53 = vunpack.i.l.bf16 %v2851_v29 }
 0x25f   : > { %v2848_v61 = vunpack.i.h.bf16 %v2846_v33  ;;  %v2847_v62 = vunpack.i.l.bf16 %v2846_v33 }
 0x260   : > { %v1567_v12 = vsel %vm1552_vm7, %v1550_v5, %v2852_v53  ;;  %v1568_v13 = vsel %vm1552_vm7, %v1551_v6, %v2853_v59 }
 0x261   : > { %v2861_v46 = vpop.permute.xlu1 %2860  ;;  %v1565_v48 = vsel %vm1552_vm7, %v1548_v26, %v2847_v62  ;;  %v1566_v0 = vsel %vm1552_vm7, %v1549_v8, %v2848_v61 }
 0x262   : > { %v2856_v52 = vpop.permute.xlu0 %2855  ;;  %v2863_v3 = vunpack.i.h.bf16 %v2861_v46  ;;  %v2862_v4 = vunpack.i.l.bf16 %v2861_v46 }
 0x263   : > { %v2858_v39 = vunpack.i.h.bf16 %v2856_v52  ;;  %v2857_v63 = vunpack.i.l.bf16 %v2856_v52 }
 0x264   : > { %v1584_v50 = vsel %vm1569_vm8, %v1567_v12, %v2862_v4  ;;  %v1585_v18 = vsel %vm1569_vm8, %v1568_v13, %v2863_v3 }
 0x265   : > { %v2871_v38 = vpop.permute.xlu1 %2870  ;;  %v1582_v20 = vsel %vm1569_vm8, %v1565_v48, %v2857_v63  ;;  %v1583_v22 = vsel %vm1569_vm8, %v1566_v0, %v2858_v39 }
 0x266   : > { %v2866_v7 = vpop.permute.xlu0 %2865  ;;  %v2873_v27 = vunpack.i.h.bf16 %v2871_v38  ;;  %v2872_v9 = vunpack.i.l.bf16 %v2871_v38 }
 0x267   : > { %v2868_v14 = vunpack.i.h.bf16 %v2866_v7  ;;  %v2867_v15 = vunpack.i.l.bf16 %v2866_v7 }
 0x268   : > { %v1601_v25 = vsel %vm1586_vm9, %v1584_v50, %v2872_v9  ;;  %v1602_v28 = vsel %vm1586_vm9, %v1585_v18, %v2873_v27 }
 0x269   : > { %v2881_v19 = vpop.permute.xlu1 %2880  ;;  %v1599_v31 = vsel %vm1586_vm9, %v1582_v20, %v2867_v15  ;;  %v1600_v2 = vsel %vm1586_vm9, %v1583_v22, %v2868_v14 }
 0x26a   : > { %v2883_v21 = vunpack.i.h.bf16 %v2881_v19  ;;  %v2882_v23 = vunpack.i.l.bf16 %v2881_v19  ;;  %v2876_v24 = vpop.permute.xlu0 %2875 }
 0x26b   : > { %v2878_v1 = vunpack.i.h.bf16 %v2876_v24  ;;  %v2877_v30 = vunpack.i.l.bf16 %v2876_v24 }
 0x26c   : > { %v1618_v29 = vsel %vm1603_vm10, %v1601_v25, %v2882_v23  ;;  %v1619_v32 = vsel %vm1603_vm10, %v1602_v28, %v2883_v21 }
 0x26d   : > { %v1627_v55 = vpack.c.bf16 %v1619_v32, %v1618_v29  ;;  %v1616_v33 = vsel %vm1603_vm10, %v1599_v31, %v2877_v30  ;;  %v1617_v56 = vsel %vm1603_vm10, %v1600_v2, %v2878_v1 }
 0x26e   : > { %v1626_v34 = vpack.c.bf16 %v1617_v56, %v1616_v33 }
 0x270   : > { %2414 = vmatprep.mubr.msk.bf16.mxu1 %vm1664_vm11, %v1626_v34 }
 0x271   : > { %2415 = vmatmul.mubr.msk.bf16.gmra.mxu1 %vm1664_vm11, %v1627_v55 }
 0x2d4   : > { %v2404_v36 = vpop.f32.mrf.mxu1 }
 0x2d5   : > { %v1799_v41 = vmul.f32 %v2404_v36, %v3787_v35 }
 0x2d6   : > { %v1727_v37 = vpop.f32.mrf.mxu1 }
 0x2d7   : > { %v1797_v40 = vmul.f32 %v3787_v35, %v1727_v37  ;;  %v1822_v47 = vadd.f32 %v3794_v43, %v1799_v41 }
 0x2d8   : > { %v2405_v42 = vpop.f32.mrf.mxu1 }
 0x2d9   : > { %v1800_v16 = vmul.f32 %v2405_v42, %v3787_v35  ;;  %v1820_v45 = vadd.f32 %v3794_v43, %v1797_v40  ;;  %v1838_v10 = vmax.f32 %v1822_v47, 0.0 }
 0x2da   : > { %v1730_v44 = vpop.f32.mrf.mxu1 }
 0x2db   : > { %v1823_v46 = vadd.f32 %v3794_v43, %v1800_v16  ;;  %v1798_v17 = vmul.f32 %v3787_v35, %v1730_v44  ;;  %v1836_v52 = vmax.f32 %v1820_v45, 0.0 }
 0x2dd   : > { %v1821_v49 = vadd.f32 %v3794_v43, %v1798_v17  ;;  %v1839_v51 = vmax.f32 %v1823_v46, 0.0 }
 0x2df   : > { %v1837_v54 = vmax.f32 %v1821_v49, 0.0  ;;  %v1853_v58 = vpack.c.bf16 %v1839_v51, %v1838_v10  ;;  %v2267_v51 = vld [vmem:[%s3246_s12 + $0x31] sm:$0xff] }
 0x2e1   : > { %v1852_v57 = vpack.c.bf16 %v1837_v54, %v1836_v52 }
 0x2e3   : > { %2420 = vmatprep.mubr.msk.bf16.mxu1 %vm761_vm2, %v1852_v57  ;;  %v2265_v57 = vld [vmem:[%s3246_s12 + $0x19] sm:$0xff] }
 0x2e4   : > { %2421 = vmatmul.mubr.msk.bf16.vlgmr.msra.gmra.mxu1 %vm761_vm2, %v1853_v58 }
 0x2f4   : > { %v2408_v11 = vpop.f32.mrf.mxu1 }
 0x2f5   : > { %v1803_v53 = vmul.f32 %v2408_v11, %v3787_v35 }
 0x2f6   : > { %v1743_v60 = vpop.f32.mrf.mxu1 }
 0x2f7   : > { %v1801_v59 = vmul.f32 %v3787_v35, %v1743_v60  ;;  %v1826_v6 = vadd.f32 %v3794_v43, %v1803_v53  ;;  %v2268_v53 = vld [vmem:[%s3246_s12 + $0x39] sm:$0xff] }
 0x2f8   : > { %v2409_v61 = vpop.f32.mrf.mxu1 }
 0x2f9   : > { %v1804_v62 = vmul.f32 %v2409_v61, %v3787_v35  ;;  %v1824_v4 = vadd.f32 %v3794_v43, %v1801_v59  ;;  %v1842_v8 = vmax.f32 %v1826_v6, 0.0 }
 0x2fa   : > { %v1746_v3 = vpop.f32.mrf.mxu1 }
 0x2fb   : > { %v1827_v38 = vadd.f32 %v3794_v43, %v1804_v62  ;;  %v1802_v5 = vmul.f32 %v3787_v35, %v1746_v3  ;;  %v1840_v7 = vmax.f32 %v1824_v4, 0.0 }
 0x2fd   : > { %v1825_v39 = vadd.f32 %v3794_v43, %v1802_v5  ;;  %v1843_v63 = vmax.f32 %v1827_v38, 0.0  ;;  %v2266_v5 = vld [vmem:[%s3246_s12 + $0x21] sm:$0xff] }
 0x2ff   : > { %v1841_v26 = vmax.f32 %v1825_v39, 0.0  ;;  %v1855_v9 = vpack.c.bf16 %v1843_v63, %v1842_v8 }
 0x301   : > { %v1854_v27 = vpack.c.bf16 %v1841_v26, %v1840_v7 }
 0x303   : > { %2424 = vmatprep.mubr.msk.bf16.mxu1 %vm761_vm2, %v1854_v27 }
 0x304   : > { %2425 = vmatmul.mubr.msk.bf16.gmra.mxu1 %vm761_vm2, %v1855_v9 }
 0x314   : > { %v2412_v12 = vpop.f32.mrf.mxu1 }
 0x315   : > { %v1807_v15 = vmul.f32 %v2412_v12, %v3787_v35  ;;  %v2271_v12 = vld [vmem:[%s3246_s12 + $0x61] sm:$0xff] }
 0x316   : > { %v1759_v13 = vpop.f32.mrf.mxu1 }
 0x317   : > { %v1805_v14 = vmul.f32 %v3787_v35, %v1759_v13  ;;  %v1830_v22 = vadd.f32 %v3794_v43, %v1807_v15 }
 0x318   : > { %v2413_v48 = vpop.f32.mrf.mxu1 }
 0x319   : > { %v1808_v0 = vmul.f32 %v2413_v48, %v3787_v35  ;;  %v1828_v18 = vadd.f32 %v3794_v43, %v1805_v14  ;;  %v1846_v28 = vmax.f32 %v1830_v22, 0.0  ;;  %v2269_v48 = vld [vmem:[%s3246_s12 + $0x49] sm:$0xff] }
 0x31a   : > { %v1762_v50 = vpop.f32.mrf.mxu1 }
 0x31b   : > { %v1831_v19 = vadd.f32 %v3794_v43, %v1808_v0  ;;  %v1806_v20 = vmul.f32 %v3787_v35, %v1762_v50  ;;  %v1844_v24 = vmax.f32 %v1828_v18, 0.0 }
 0x31d   : > { %v1829_v21 = vadd.f32 %v3794_v43, %v1806_v20  ;;  %v1847_v23 = vmax.f32 %v1831_v19, 0.0  ;;  %v2272_v20 = vld [vmem:[%s3246_s12 + $0x69] sm:$0xff] }
 0x31f   : > { %v1845_v25 = vmax.f32 %v1829_v21, 0.0  ;;  %v1857_v30 = vpack.c.bf16 %v1847_v23, %v1846_v28  ;;  %v2270_v28 = vld [vmem:[%s3246_s12 + $0x51] sm:$0xff] }
 0x321   : > { %v1856_v1 = vpack.c.bf16 %v1845_v25, %v1844_v24 }
 0x323   : > { %2428 = vmatprep.mubr.msk.bf16.mxu1 %vm761_vm2, %v1856_v1 }
 0x324   : > { %2429 = vmatmul.mubr.msk.bf16.gmra.mxu1 %vm761_vm2, %v1857_v30 }
 0x331   : > { %v2416_v31 = vpop.f32.mrf.mxu1 }
 0x332   : > { %v1811_v32 = vmul.f32 %v2416_v31, %v3787_v35 }
 0x333   : > { %v1775_v2 = vpop.f32.mrf.mxu1 }
 0x334   : > { %v1809_v29 = vmul.f32 %v3787_v35, %v1775_v2  ;;  %v1834_v40 = vadd.f32 %v3794_v43, %v1811_v32 }
 0x335   : > { %v2417_v55 = vpop.f32.mrf.mxu1 }
 0x336   : > { %v1812_v33 = vmul.f32 %v2417_v55, %v3787_v35  ;;  %v1832_v34 = vadd.f32 %v3794_v43, %v1809_v29  ;;  %v1850_v45 = vmax.f32 %v1834_v40, 0.0  ;;  %v2273_v40 = vld [vmem:[%s3246_s12 + $0x79] sm:$0xff] }
 0x337   : > { %v1778_v56 = vpop.f32.mrf.mxu1 }
 0x338   : > { %v1835_v36 = vadd.f32 %v3794_v43, %v1812_v33  ;;  %v1810_v37 = vmul.f32 %v3787_v35, %v1778_v56  ;;  %v1848_v16 = vmax.f32 %v1832_v34, 0.0  ;;  %v3837_v35 = vld [vmem:[%s4005_s8] ss:$0 sm:$0xff]  ;;  %v2275_v56 = vld [vmem:[%s3246_s12 + $0x91] sm:$0xff] }
 0x33a   : > { %v1833_v41 = vadd.f32 %v3794_v43, %v1810_v37  ;;  %v1851_v42 = vmax.f32 %v1835_v36, 0.0  ;;  %v3842_v43 = vld [vmem:[%s4031_s24] ss:$0 sm:$0xff]  ;;  %s3054_s24 = smov [#allocation6]  }
 0x33b   : > { %s2921_s22 = sshll.u32 %s3054_s24, 4  ;;  %s2922_s22 = int_to_ptr.vmem [resolvable:$false] %s2921_s22 }
 0x33c   : > { %v1849_v44 = vmax.f32 %v1833_v41, 0.0  ;;  %v1859_v17 = vpack.c.bf16 %v1851_v42, %v1850_v45  ;;  %v2276_v45 = vld [vmem:[%s3246_s12 + $0x99] sm:$0xff]  ;;  %s2923_s20 = scalar_lea.vmem %s2922_s22, 4096  ;;  %p2924_p10 = scmp.lt.s32.totalorder %s3930_s27, %s2922_s22 }
 0x33d   : > { %p2925_p3 = scmp.lt.s32.totalorder %s2923_s20, %s2917_s21 }
 0x33e   : > { %v1858_v46 = vpack.c.bf16 %v1849_v44, %v1848_v16 }
 0x33f   : > { %p2926_p11 = por %p2925_p3, %p2924_p10 }
 0x340   : > { %2432 = vmatprep.mubr.msk.bf16.mxu1 %vm761_vm2, %v1858_v46 }
 0x341   : > { %2433 = vmatmul.mubr.msk.bf16.gmra.mxu1 %vm761_vm2, %v1859_v17  ;;  %p2927_p13 = pnand %p2926_p11, %p2920_p9 }
 0x3a4   : > { %v2422_v47 = vpop.f32.mrf.mxu1 }
 0x3a5   : > { %v1994_v49 = vmul.f32 %v2422_v47, %v3837_v35 }
 0x3a6   : > { %v1922_v52 = vpop.f32.mrf.mxu1 }
 0x3a7   : > { %v2017_v54 = vadd.f32 %v3842_v43, %v1994_v49  ;;  %v1992_v10 = vmul.f32 %v3837_v35, %v1922_v52  ;;  %v2274_v52 = vld [vmem:[%s3246_s12 + $0x81] sm:$0xff] }
 0x3a8   : > { %v2423_v58 = vpop.f32.mrf.mxu1 }
 0x3a9   : > { %v2052_v11 = vadd.f32 %v2267_v51, %v2017_v54  ;;  %v2015_v60 = vadd.f32 %v3842_v43, %v1992_v10  ;;  %v1995_v59 = vmul.f32 %v2423_v58, %v3837_v35 }
 0x3aa   : > { %v1925_v61 = vpop.f32.mrf.mxu1 }
 0x3ab   : > { %v2068_v62 = vmax.f32 %v2052_v11, 0.0  ;;  %v2050_v3 = vadd.f32 %v2265_v57, %v2015_v60  ;;  %v2018_v4 = vadd.f32 %v3842_v43, %v1995_v59  ;;  %v1993_v38 = vmul.f32 %v3837_v35, %v1925_v61  ;;  %v2279_v61 = vld [vmem:[%s3246_s12 + $0xc1] sm:$0xff] }
 0x3ad   : > { %2084 = vst.msk [vmem:[%s3468_s10 + $0x10] sm:$0xff] %vm458_vm1, %v2068_v62  ;;  %v2066_v6 = vmax.f32 %v2050_v3, 0.0  ;;  %v2053_v39 = vadd.f32 %v2268_v53, %v2018_v4  ;;  %v2016_v63 = vadd.f32 %v3842_v43, %v1993_v38  ;;  %v2277_v38 = vld [vmem:[%s3246_s12 + $0xa9] sm:$0xff] }
 0x3af   : > { %2082 = vst.msk [vmem:[%s3468_s10] sm:$0xff] %vm458_vm1, %v2066_v6  ;;  %v2069_v7 = vmax.f32 %v2053_v39, 0.0  ;;  %v2051_v26 = vadd.f32 %v2266_v5, %v2016_v63 }
 0x3b1   : > { %2085 = vst.msk [vmem:[%s3468_s10 + $0x18] sm:$0xff] %vm458_vm1, %v2069_v7  ;;  %v2067_v8 = vmax.f32 %v2051_v26, 0.0  ;;  %v2280_v7 = vld [vmem:[%s3246_s12 + $0xc9] sm:$0xff] }
 0x3b3   : > { %2083 = vst.msk [vmem:[%s3468_s10 + $0x8] sm:$0xff] %vm458_vm1, %v2067_v8 }
 0x3c4   : > { %v2426_v27 = vpop.f32.mrf.mxu1 }
 0x3c5   : > { %v1998_v9 = vmul.f32 %v2426_v27, %v3837_v35 }
 0x3c6   : > { %v1938_v13 = vpop.f32.mrf.mxu1 }
 0x3c7   : > { %v2021_v14 = vadd.f32 %v3842_v43, %v1998_v9  ;;  %v1996_v15 = vmul.f32 %v3837_v35, %v1938_v13  ;;  %v2278_v13 = vld [vmem:[%s3246_s12 + $0xb1] sm:$0xff]  ;;  %s3936_s12 = scalar_lea.sflag [#allocation5], %s389_s18 }
 0x3c8   : > { %v2427_v0 = vpop.f32.mrf.mxu1 }
 0x3c9   : > { %v2056_v50 = vadd.f32 %v2271_v12, %v2021_v14  ;;  %v2019_v18 = vadd.f32 %v3842_v43, %v1996_v15  ;;  %v1999_v19 = vmul.f32 %v2427_v0, %v3837_v35 }
 0x3ca   : > { %v1941_v22 = vpop.f32.mrf.mxu1 }
 0x3cb   : > { %v2072_v21 = vmax.f32 %v2056_v50, 0.0  ;;  %v2054_v23 = vadd.f32 %v2269_v48, %v2019_v18  ;;  %v2022_v24 = vadd.f32 %v3842_v43, %v1999_v19  ;;  %v1997_v25 = vmul.f32 %v3837_v35, %v1941_v22 }
 0x3cd   : > { %2088 = vst.msk [vmem:[%s3468_s10 + $0x30] sm:$0xff] %vm458_vm1, %v2072_v21  ;;  %v2070_v1 = vmax.f32 %v2054_v23, 0.0  ;;  %v2057_v30 = vadd.f32 %v2272_v20, %v2022_v24  ;;  %v2020_v31 = vadd.f32 %v3842_v43, %v1997_v25 }
 0x3cf   : > { %2086 = vst.msk [vmem:[%s3468_s10 + $0x20] sm:$0xff] %vm458_vm1, %v2070_v1  ;;  %v2073_v2 = vmax.f32 %v2057_v30, 0.0  ;;  %v2055_v29 = vadd.f32 %v2270_v28, %v2020_v31 }
 0x3d1   : > { %2089 = vst.msk [vmem:[%s3468_s10 + $0x38] sm:$0xff] %vm458_vm1, %v2073_v2  ;;  %v2071_v32 = vmax.f32 %v2055_v29, 0.0 }
 0x3d3   : > { %2087 = vst.msk [vmem:[%s3468_s10 + $0x28] sm:$0xff] %vm458_vm1, %v2071_v32 }
 0x3e4   : > { %v2430_v55 = vpop.f32.mrf.mxu1 }
 0x3e5   : > { %v2002_v33 = vmul.f32 %v2430_v55, %v3837_v35 }
 0x3e6   : > { %v1954_v34 = vpop.f32.mrf.mxu1 }
 0x3e7   : > { %v2025_v36 = vadd.f32 %v3842_v43, %v2002_v33  ;;  %v2000_v37 = vmul.f32 %v3837_v35, %v1954_v34 }
 0x3e8   : > { %v2431_v41 = vpop.f32.mrf.mxu1 }
 0x3e9   : > { %v2060_v42 = vadd.f32 %v2275_v56, %v2025_v36  ;;  %v2023_v16 = vadd.f32 %v3842_v43, %v2000_v37  ;;  %v2003_v44 = vmul.f32 %v2431_v41, %v3837_v35 }
 0x3ea   : > { %v1957_v46 = vpop.f32.mrf.mxu1 }
 0x3eb   : > { %v2076_v17 = vmax.f32 %v2060_v42, 0.0  ;;  %v2058_v47 = vadd.f32 %v2273_v40, %v2023_v16  ;;  %v2026_v49 = vadd.f32 %v3842_v43, %v2003_v44  ;;  %v2001_v51 = vmul.f32 %v3837_v35, %v1957_v46 }
 0x3ed   : > { %2092 = vst.msk [vmem:[%s3468_s10 + $0x50] sm:$0xff] %vm458_vm1, %v2076_v17  ;;  %v2074_v54 = vmax.f32 %v2058_v47, 0.0  ;;  %v2061_v10 = vadd.f32 %v2276_v45, %v2026_v49  ;;  %v2024_v57 = vadd.f32 %v3842_v43, %v2001_v51 }
 0x3ef   : > { %2090 = vst.msk [vmem:[%s3468_s10 + $0x40] sm:$0xff] %vm458_vm1, %v2074_v54  ;;  %v2077_v58 = vmax.f32 %v2061_v10, 0.0  ;;  %v2059_v11 = vadd.f32 %v2274_v52, %v2024_v57 }
 0x3f1   : > { %2093 = vst.msk [vmem:[%s3468_s10 + $0x58] sm:$0xff] %vm458_vm1, %v2077_v58  ;;  %v2075_v60 = vmax.f32 %v2059_v11, 0.0 }
 0x3f3   : > { %2091 = vst.msk [vmem:[%s3468_s10 + $0x48] sm:$0xff] %vm458_vm1, %v2075_v60 }
 0x401   : > { %v2434_v59 = vpop.f32.mrf.mxu1 }
 0x402   : > { %v2006_v53 = vmul.f32 %v2434_v59, %v3837_v35 }
 0x403   : > { %v1970_v62 = vpop.f32.mrf.mxu1 }
 0x404   : > { %v2029_v3 = vadd.f32 %v3842_v43, %v2006_v53  ;;  %v2004_v4 = vmul.f32 %v3837_v35, %v1970_v62 }
 0x405   : > { %v2435_v5 = vpop.f32.mrf.mxu1 }
 0x406   : > { %v2064_v6 = vadd.f32 %v2279_v61, %v2029_v3  ;;  %v2027_v39 = vadd.f32 %v3842_v43, %v2004_v4  ;;  %v2007_v63 = vmul.f32 %v2435_v5, %v3837_v35 }
 0x407   : > { %v1973_v26 = vpop.f32.mrf.mxu1 }
 0x408   : > { %v2080_v8 = vmax.f32 %v2064_v6, 0.0  ;;  %v2062_v27 = vadd.f32 %v2277_v38, %v2027_v39  ;;  %v2030_v9 = vadd.f32 %v3842_v43, %v2007_v63  ;;  %v2005_v12 = vmul.f32 %v3837_v35, %v1973_v26 }
 0x40a   : > { %2096 = vst.msk [vmem:[%s3468_s10 + $0x70] sm:$0xff] %vm458_vm1, %v2080_v8  ;;  %v2078_v14 = vmax.f32 %v2062_v27, 0.0  ;;  %v2065_v15 = vadd.f32 %v2280_v7, %v2030_v9  ;;  %v2028_v48 = vadd.f32 %v3842_v43, %v2005_v12 }
 0x40c   : > { %2094 = vst.msk [vmem:[%s3468_s10 + $0x60] sm:$0xff] %vm458_vm1, %v2078_v14  ;;  %v2081_v0 = vmax.f32 %v2065_v15, 0.0  ;;  %v2063_v50 = vadd.f32 %v2278_v13, %v2028_v48 }
 0x40e   : > { %2097 = vst.msk [vmem:[%s3468_s10 + $0x78] sm:$0xff] %vm458_vm1, %v2081_v0  ;;  %v2079_v35 = vmax.f32 %v2063_v50, 0.0 }
 0x410   : > { %2095 = vst.msk [vmem:[%s3468_s10 + $0x68] sm:$0xff] %vm458_vm1, %v2079_v35 }
 0x411   : > { %2930 = shalt.err (!%p2927_p13)
}
 0x412   : > { %s2931_s18 = scalar_lea.hbm %s3926_s29, 2048  ;;  %s2935_s16 = scalar_lea.hbm %s4033_s25, 8192 }
 0x413   : > { %p2932_p0 = scmp.ne.s32.totalorder %s3926_s29, %s2931_s18  ;;  %p2936_p7 = scmp.lt.s32.totalorder %s3926_s29, %s4033_s25 }
 0x414   : > { %p2937_p4 = scmp.lt.s32.totalorder %s2935_s16, %s2931_s18 }
 0x415   : > { %p2933_p1 = pnand %p2932_p0, %p3193_p12 }
 0x416   : > { %p2938_p5 = por %p2937_p4, %p2936_p7 }
 0x417   : > { %p2934_p6 = pneg %p2933_p1 }
 0x419   : > { %p2939_p8 = pnand %p2938_p5, %p2934_p6 }
 0x41b   : > { %2942 = shalt.err (!%p2939_p8)
}
 0x41c   : > { %s3055_s11 = smov 128  }
 0x41d   : > { %2447 = dma.vmem_to_hbm [thread:$0]  (%p3193_p12), %s3930_s27, 2048, %s3926_s29, %s3936_s12, %s3055_s11, %s3055_s11, %s3047_s15  }
 0x41e PF: > { %p2458_p9 = scmp.ge.s32.totalorder %s3037_s23, 2  ;;  %s2130_s21 = sand.u32 1, %s2997_s13  }
 0x41f   : > { %s2131_s24 = scalar_lea.sflag [#allocation5], %s2130_s21 }
 0x420   : > { %p2454_p10 = pnand %p2458_p9, %p3206_p2 }
 0x422   : > { %p2455_p3 = pneg %p2454_p10 }
 0x424   : > { %2992 = dma.done.wait (%p2455_p3), %s2131_s24, 2048  }
 0x425   : > { %2994 = vsyncadd (%p2455_p3), %s2131_s24, 4294965248  ;;  %s26_s23 = sadd.s32 1, %s3037_s23   ;;  %s4034_s26 = sld [smem:[#allocation9_spill]] }
 0x426   : > { %p23_p11 = scmp.ge.s32.totalorder %s26_s23, 6   ;;  %s4035_s15 = sld [smem:[#allocation17_spill]] }
 0x427   : > { %s4036_s27 = sld [smem:[#allocation10_spill]]  ;;  %s4042_s13 = smov %s3001_s14 }
 0x428   : > { %s4037_s18 = sld [smem:[#allocation16_spill]]  ;;  %s4044_s16 = smov %s3013_s17 }
 0x429   : > { %s4038_s19 = sld [smem:[#allocation12_spill]]  ;;  %25 = sbr.rel (!%p23_p11) target bundleno = 12 (0xc), region = 118 }
 0x42a   : > { %s4039_s20 = sld [smem:[#allocation13_spill]] }
 0x42b   : > { %s4040_s21 = sld [smem:[#allocation14_spill]]  ;;  %s4043_s14 = smov %s4034_s26 }
 0x42c   : > { %s4041_s22 = sld [smem:[#allocation15_spill]] }
 0x42d   : > { %s4045_s17 = smov %s4036_s27 }
 0x42e   :  { %2136 = vsyncpa [#allocation4], 1 }
 0x42f   :  { %2138 = vsyncpa [#allocation4 + $0x1], 1 }
 0x430   :  { %2139 = vsyncpa [#allocation5], 1 }
 0x431   :  { %2141 = vsyncpa [#allocation5 + $0x1], 1 }

</bundles_post_ra>
